<compile_context>
chip_gen: v7x
topology: tpu7x:2x2x1
jax: 0.10.0
libtpu: 0.0.40
codegen_flags: <defaults>
</compile_context>

<pallas_src>
import functools

import jax
import jax.numpy as jnp
from jax.experimental import pallas as pl
from jax.experimental.pallas import tpu as pltpu

BN_EPS = 1e-5
LANE = 128
SUBLANE = 8


def _round_up(x, m):
    return ((x + m - 1) // m) * m


def gnn_fused_kernel(x0_ref, src_ref, dst_ref, ea_ref,
                     we_ref, w_ref, vec_ref,
                     o_ref,
                     x_state, gsrc_scr, gdst_scr,
                     *, jk_mode):
    l = pl.program_id(0)
    n_layers = pl.num_programs(0)

    @pl.when(l == 0)
    def _():
        # carry-state init + one-time construction of the transposed one-hot
        # gather/scatter operators (Np, Ep) in bf16 (0/1 exact in bf16).
        x_state[...] = x0_ref[...]
        node_iota = jax.lax.broadcasted_iota(jnp.int32, gsrc_scr.shape, 0)  # (Np, Ep)
        gsrc_scr[...] = (node_iota == src_ref[...]).astype(jnp.bfloat16)
        gdst_scr[...] = (node_iota == dst_ref[...]).astype(jnp.bfloat16)

    x = x_state[...]                                              # (Np, Dp) f32

    vec = vec_ref[...]                                            # (8, Dp) f32
    be = vec[0:1, :]
    b = vec[1:2, :]
    gin_scale = vec[2:3, :]
    bn_scale = vec[3:4, :]
    bn_shift = vec[4:5, :]

    # edge-feature projection, once per layer (bf16 MXU inputs, f32 accumulate)
    e_emb = jnp.dot(ea_ref[...], we_ref[...],
                    preferred_element_type=jnp.float32) + be      # (Ep, Dp)

    gT_src = gsrc_scr[...]                                        # (Np, Ep) bf16
    gT_dst = gdst_scr[...]                                        # (Np, Ep) bf16

    # gather source-node features: contract the NODE axis of the transposed
    # src one-hot (bf16 MXU, f32 accumulation)
    x_src = jax.lax.dot_general(gT_src, x.astype(jnp.bfloat16),
                                dimension_numbers=(((0,), (0,)), ((), ())),
                                preferred_element_type=jnp.float32)  # (Ep, Dp)
    msg = jnp.maximum(x_src + e_emb, 0.0)                         # relu messages

    # scatter-add messages to destination nodes: (Np, Ep) @ (Ep, Dp), bf16 MXU
    agg = jnp.dot(gT_dst, msg.astype(jnp.bfloat16),
                  preferred_element_type=jnp.float32)             # (Np, Dp)

    pre = gin_scale * x + agg                                     # (1+eps)*x + agg
    h = jnp.dot(pre, w_ref[...], preferred_element_type=jnp.float32) + b
    h = h * bn_scale + bn_shift                                   # folded BN (eval)
    h = jnp.maximum(h, 0.0)                                       # relu; dropout(eval)=id

    x_state[...] = h                                              # carry to next layer

    # jump-knowledge-aware output (static branch, baked at trace time)
    if jk_mode == "concat":
        o_ref[...] = h
    elif jk_mode == "sum":
        @pl.when(l == 0)
        def _():
            o_ref[...] = h

        @pl.when(l != 0)
        def _():
            o_ref[...] = o_ref[...] + h
    elif jk_mode == "max":
        @pl.when(l == 0)
        def _():
            o_ref[...] = h

        @pl.when(l != 0)
        def _():
            o_ref[...] = jnp.maximum(o_ref[...], h)
    else:  # "last"
        @pl.when(l == n_layers - 1)
        def _():
            o_ref[...] = h


def gnn_forward_fused(x0, src_idx, dst_idx, edge_attr, We, W, vecs, jk_mode):
    L, De_p, Dp = We.shape
    Np = x0.shape[0]
    Ep = edge_attr.shape[0]

    def const(shape):
        return pl.BlockSpec(shape, lambda l: (0,) * len(shape))

    def per_layer(shape):
        return pl.BlockSpec((None,) + shape, lambda l: (l,) + (0,) * len(shape))

    if jk_mode == "concat":
        out_shape = jax.ShapeDtypeStruct((L, Np, Dp), jnp.float32)
        out_spec = pl.BlockSpec((None, Np, Dp), lambda l: (l, 0, 0))
    else:
        out_shape = jax.ShapeDtypeStruct((Np, Dp), jnp.float32)
        out_spec = pl.BlockSpec((Np, Dp), lambda l: (0, 0))

    # ---- shape-derived VMEM budget (clamped to 3/4 of the chip's capacity) ----
    per_buf = (Np * Dp * 4                       # x0 (f32)
               + 2 * SUBLANE * Ep * 4            # src/dst index rows (1, Ep) i32
               + Ep * De_p * 2                   # edge_attr bf16
               + De_p * Dp * 2 + Dp * Dp * 4     # We bf16 + W f32
               + SUBLANE * Dp * 4                # packed per-layer vectors
               + Np * Dp * 4)                    # output block
    scratch_bytes = Np * Dp * 4 + 2 * Np * Ep * 2
    needed = 2 * per_buf + scratch_bytes + (8 << 20)   # double buffers + headroom
    try:
        vmem_cap = pltpu.get_tpu_info().vmem_capacity_bytes
    except Exception:
        vmem_cap = 64 << 20                      # conservative (v7x per-TC)
    vmem_limit = int(min(max(needed, 32 << 20), (vmem_cap * 3) // 4))

    grid_spec = pltpu.PrefetchScalarGridSpec(
        num_scalar_prefetch=0,
        grid=(L,),
        in_specs=[
            const((Np, Dp)),          # x0 (resident)
            const((1, Ep)),           # src indices (resident, tiny)
            const((1, Ep)),           # dst indices (resident, tiny)
            const((Ep, De_p)),        # edge_attr bf16 (resident)
            per_layer((De_p, Dp)),    # We[l] bf16
            per_layer((Dp, Dp)),      # W[l]  f32
            per_layer((8, Dp)),       # packed [be, b, 1+eps, bn_scale, bn_shift]
        ],
        out_specs=out_spec,
        scratch_shapes=[
            pltpu.VMEM((Np, Dp), jnp.float32),    # node state carried across layers
            pltpu.VMEM((Np, Ep), jnp.bfloat16),   # transposed src one-hot
            pltpu.VMEM((Np, Ep), jnp.bfloat16),   # transposed dst one-hot
        ],
    )

    # TODO(synk): for production-size graphs add a node-tile "parallel" grid axis
    # (megacore on v7x) and an inner edge-tile "arbitrary" axis once the resident
    # operators approach the VMEM budget; kept fully resident at these sizes.
    return pl.pallas_call(
        functools.partial(gnn_fused_kernel, jk_mode=jk_mode),
        out_shape=out_shape,
        grid_spec=grid_spec,
        compiler_params=pltpu.CompilerParams(
            dimension_semantics=("arbitrary",),   # state carried across layers
            vmem_limit_bytes=vmem_limit,
        ),
    )(x0, src_idx, dst_idx, edge_attr, We, W, vecs)


class GNNPallas:
    """JAX/Pallas re-implementation of deepchem GNN.forward (eval mode)."""

    def __init__(self, key, num_layers, emb_dim, edge_dim,
                 num_atom_types=120, num_chirality=3,
                 dropout=0.1, jump_knowledge="last"):
        self.num_layers = num_layers
        self.emb_dim = emb_dim
        self.edge_dim = edge_dim
        self.jump_knowledge = jump_knowledge
        self.dropout = dropout  # eval mode -> identity

        self.dp = _round_up(emb_dim, LANE)     # lane-dense hidden dim
        self.dep = _round_up(edge_dim, LANE)   # lane-dense edge-feature dim

        keys = jax.random.split(key, 2 + 6 * num_layers)

        def xav(k, shp):
            bound = jnp.sqrt(6.0 / (shp[0] + shp[1]))
            return jax.random.uniform(k, shp, jnp.float32, -bound, bound)

        self.node_type_embedding = xav(keys[0], (num_atom_types, emb_dim))
        self.chirality_embedding = xav(keys[1], (num_chirality, emb_dim))

        def pad_row(v, pad_val=0.0):
            return jnp.full((self.dp,), pad_val, jnp.float32).at[:emb_dim].set(v)

        We_l, W_l, vec_l, raw_l = [], [], [], []
        for i in range(num_layers):
            k = jax.random.split(keys[2 + 6 * i], 6)
            We = xav(k[0], (edge_dim, emb_dim))
            be = 0.01 * jax.random.normal(k[1], (emb_dim,), jnp.float32)
            W = xav(k[2], (emb_dim, emb_dim))
            b = 0.01 * jax.random.normal(k[3], (emb_dim,), jnp.float32)
            gamma = 1.0 + 0.1 * jax.random.normal(k[4], (emb_dim,), jnp.float32)
            beta = 0.1 * jax.random.normal(k[5], (emb_dim,), jnp.float32)
            mean = jnp.zeros((emb_dim,), jnp.float32)
            var = jnp.ones((emb_dim,), jnp.float32)
            gin_eps = 0.0  # GIN eps default

            # fold BatchNorm (eval, running stats) into one scale/shift pair
            bn_scale = gamma * jax.lax.rsqrt(var + BN_EPS)
            bn_shift = beta - mean * bn_scale

            # pad weights so padded FEATURE COLUMNS stay exactly 0 through all layers
            We_p = jnp.zeros((self.dep, self.dp), jnp.float32
                             ).at[:edge_dim, :emb_dim].set(We)
            W_p = jnp.zeros((self.dp, self.dp), jnp.float32
                            ).at[:emb_dim, :emb_dim].set(W)

            vec = (jnp.zeros((SUBLANE, self.dp), jnp.float32)
                   .at[0].set(pad_row(be))
                   .at[1].set(pad_row(b))
                   .at[2].set(jnp.full((self.dp,), 1.0 + gin_eps, jnp.float32))
                   .at[3].set(pad_row(bn_scale, 1.0))
                   .at[4].set(pad_row(bn_shift, 0.0)))

            We_l.append(We_p.astype(jnp.bfloat16))
            W_l.append(W_p)
            vec_l.append(vec)
            raw_l.append(dict(We=We, be=be, W=W, b=b, bn_scale=bn_scale,
                              bn_shift=bn_shift, gin_eps=gin_eps))

        self.We = jnp.stack(We_l)       # (L, Dep, Dp) bf16
        self.W = jnp.stack(W_l)         # (L, Dp, Dp)  f32
        self.vecs = jnp.stack(vec_l)    # (L, 8, Dp)   f32
        self._raw = raw_l               # unfused params for the pure-JAX reference

    def _embed(self, node_features):
        node_emb = self.node_type_embedding[node_features[:, 0]]
        chir_emb = self.chirality_embedding[node_features[:, 1]]
        return (node_emb + chir_emb).astype(jnp.float32)

    def __call__(self, data):
        node_features = data["node_features"]        # (N, 2) int32
        edge_index = data["edge_index"]              # (2, E) int32
        edge_features = data["edge_features"]        # (E, edge_dim) f32
        n = node_features.shape[0]
        e = edge_index.shape[1]

        x = self._embed(node_features)               # (N, D) f32

        # lane-dense padding; padded nodes/edges contribute exactly 0 to real rows
        np_ = _round_up(n, LANE)
        ep = _round_up(e, LANE)
        x_pad = jnp.zeros((np_, self.dp), jnp.float32).at[:n, :self.emb_dim].set(x)

        # pad edges point at an out-of-range node index -> all-zero one-hot column
        src = jnp.full((1, ep), np_, jnp.int32).at[0, :e].set(edge_index[0])
        dst = jnp.full((1, ep), np_, jnp.int32).at[0, :e].set(edge_index[1])

        ea_pad = jnp.zeros((ep, self.dep), jnp.bfloat16
                           ).at[:e, :self.edge_dim].set(edge_features.astype(jnp.bfloat16))

        jk = self.jump_knowledge if self.jump_knowledge in ("last", "concat", "sum",
                                                            "max") else "last"

        out = gnn_forward_fused(x_pad, src, dst, ea_pad,
                                self.We, self.W, self.vecs, jk)

        if jk == "concat":
            h_list = [x] + [out[i, :n, :self.emb_dim] for i in range(self.num_layers)]
            node_representation = jnp.concatenate(h_list, axis=1)
        elif jk == "sum":
            node_representation = x + out[:n, :self.emb_dim]
        elif jk == "max":
            node_representation = jnp.maximum(x, out[:n, :self.emb_dim])
        else:  # last
            node_representation = out[:n, :self.emb_dim]
        return node_representation, data

    # ---------------- pure-JAX reference (f32), eval-mode semantics ----------------
    def reference(self, data):
        node_features = data["node_features"]
        edge_index = data["edge_index"]
        edge_features = data["edge_features"]
        n = node_features.shape[0]
        src, dst = edge_index[0], edge_index[1]

        x = self._embed(node_features)
        h_list = [x]
        h = x
        for p in self._raw:
            e_emb = edge_features @ p["We"] + p["be"]
            msg = jnp.maximum(h[src] + e_emb, 0.0)
            agg = jax.ops.segment_sum(msg, dst, num_segments=n)
            pre = (1.0 + p["gin_eps"]) * h + agg
            h = pre @ p["W"] + p["b"]
            h = h * p["bn_scale"] + p["bn_shift"]
            h = jnp.maximum(h, 0.0)
            h_list.append(h)

        jk = self.jump_knowledge if self.jump_knowledge in ("last", "concat", "sum",
                                                            "max") else "last"
        if jk == "concat":
            return jnp.concatenate(h_list, axis=1)
        if jk == "sum":
            return jnp.sum(jnp.stack(h_list, 0), axis=0)
        if jk == "max":
            return jnp.max(jnp.stack(h_list, 0), axis=0)
        return h_list[-1]


if __name__ == "__main__":
    key = jax.random.PRNGKey(0)
    k_graph, k_model = jax.random.split(key)

    # small synthetic batched graph
    N_NODES, N_EDGES, EMB_DIM, EDGE_DIM, NUM_LAYERS = 24, 48, 32, 8, 3

    kn, kc, ke, kf = jax.random.split(k_graph, 4)
    node_features = jnp.stack([
        jax.random.randint(kn, (N_NODES,), 0, 120),   # atom type index
        jax.random.randint(kc, (N_NODES,), 0, 3),     # chirality index
    ], axis=1).astype(jnp.int32)
    edge_index = jax.random.randint(ke, (2, N_EDGES), 0, N_NODES).astype(jnp.int32)
    edge_features = jax.random.normal(kf, (N_EDGES, EDGE_DIM), jnp.float32)

    data = {
        "node_features": node_features,
        "edge_index": edge_index,
        "edge_features": edge_features,
    }

    model = GNNPallas(k_model, NUM_LAYERS, EMB_DIM, EDGE_DIM,
                      dropout=0.1, jump_knowledge="last")

    expected_dims = {
        "last": EMB_DIM,
        "concat": EMB_DIM * (NUM_LAYERS + 1),
        "sum": EMB_DIM,
        "max": EMB_DIM,
    }
    for jk, dim in expected_dims.items():
        model.jump_knowledge = jk
        rep, _ = model(data)
        rep = jax.block_until_ready(rep)
        assert rep.shape == (N_NODES, dim), (jk, rep.shape)
        assert bool(jnp.all(jnp.isfinite(rep))), jk
        ref = jax.block_until_ready(model.reference(data))
        # bf16 gather/scatter operands -> ~1e-2 relative deviation from f32 reference
        err = jnp.max(jnp.abs(rep - ref)) / (jnp.max(jnp.abs(ref)) + 1e-6)
        assert float(err) < 5e-2, (jk, float(err))

    # TODO(synk): F.dropout / BatchNorm batch-statistics are training-mode only;
    # this kernel implements eval-mode semantics (dropout=identity, running stats).
    print("KERNEL_OK")
</pallas_src>

<mosaic_0001>
module attributes {stable_mosaic.version = 11 : i64} {
  func.func @gnn_fused_kernel(%arg0: i32, %arg1: memref<128x128xf32, #tpu.memory_space<vmem>>, %arg2: memref<1x128xi32, #tpu.memory_space<vmem>>, %arg3: memref<1x128xi32, #tpu.memory_space<vmem>>, %arg4: memref<128x128xbf16, #tpu.memory_space<vmem>>, %arg5: memref<1x128x128xbf16, #tpu.memory_space<vmem>>, %arg6: memref<1x128x128xf32, #tpu.memory_space<vmem>>, %arg7: memref<1x8x128xf32, #tpu.memory_space<vmem>>, %arg8: memref<128x128xf32, #tpu.memory_space<vmem>>, %arg9: memref<128x128xf32, #tpu.memory_space<vmem>>, %arg10: memref<128x128xbf16, #tpu.memory_space<vmem>>, %arg11: memref<128x128xbf16, #tpu.memory_space<vmem>>) attributes {dimension_semantics = [#tpu.dimension_semantics<arbitrary>], iteration_bounds = array<i64: 3>, scalar_prefetch = 0 : i64, scratch_operands = 3 : i64, tpu.core_type = #tpu.core_type<tc>, window_params = [{pipeline_mode = #tpu.pipeline_mode<synchronous>, transform_indices = @transform_0, window_bounds = array<i64: 128, 128>}, {pipeline_mode = #tpu.pipeline_mode<synchronous>, transform_indices = @transform_1, window_bounds = array<i64: 1, 128>}, {pipeline_mode = #tpu.pipeline_mode<synchronous>, transform_indices = @transform_2, window_bounds = array<i64: 1, 128>}, {pipeline_mode = #tpu.pipeline_mode<synchronous>, transform_indices = @transform_3, window_bounds = array<i64: 128, 128>}, {transform_indices = @transform_4, window_bounds = array<i64: 1, 128, 128>}, {transform_indices = @transform_5, window_bounds = array<i64: 1, 128, 128>}, {transform_indices = @transform_6, window_bounds = array<i64: 1, 8, 128>}, {pipeline_mode = #tpu.pipeline_mode<synchronous>, transform_indices = @transform_7, window_bounds = array<i64: 128, 128>}]} {
    %c0_i32 = arith.constant 0 : i32
    %0 = arith.cmpi eq, %arg0, %c0_i32 : i32
    %1 = arith.extui %0 : i1 to i32
    %c0_i32_0 = arith.constant 0 : i32
    %2 = arith.cmpi ne, %1, %c0_i32_0 : i32
    scf.if %2 {
      %c0_25 = arith.constant 0 : index
      %c0_26 = arith.constant 0 : index
      %44 = vector.load %arg1[%c0_25, %c0_26] : memref<128x128xf32, #tpu.memory_space<vmem>>, vector<128x128xf32>
      %c0_27 = arith.constant 0 : index
      %c0_28 = arith.constant 0 : index
      %45 = vector.load %arg9[%c0_27, %c0_28] : memref<128x128xf32, #tpu.memory_space<vmem>>, vector<128x128xf32>
      tpu.vector_store %arg9[%c0_27, %c0_28], %44 {strides = array<i32>} : memref<128x128xf32, #tpu.memory_space<vmem>>, vector<128x128xf32>,
      %46 = tpu.iota {dimensions = array<i32: 0>} : vector<128x128xi32>
      %c0_29 = arith.constant 0 : index
      %c0_30 = arith.constant 0 : index
      %47 = vector.load %arg2[%c0_29, %c0_30] : memref<1x128xi32, #tpu.memory_space<vmem>>, vector<1x128xi32>
      %48 = vector.broadcast %47 : vector<1x128xi32> to vector<128x128xi32>
      %49 = arith.cmpi eq, %46, %48 : vector<128x128xi32>
      %50 = arith.extui %49 : vector<128x128xi1> to vector<128x128xi32>
      %51 = arith.sitofp %50 : vector<128x128xi32> to vector<128x128xf32>
      %52 = arith.truncf %51 : vector<128x128xf32> to vector<128x128xbf16>
      %c0_31 = arith.constant 0 : index
      %c0_32 = arith.constant 0 : index
      %53 = vector.load %arg10[%c0_31, %c0_32] : memref<128x128xbf16, #tpu.memory_space<vmem>>, vector<128x128xbf16>
      tpu.vector_store %arg10[%c0_31, %c0_32], %52 {strides = array<i32>} : memref<128x128xbf16, #tpu.memory_space<vmem>>, vector<128x128xbf16>,
      %c0_33 = arith.constant 0 : index
      %c0_34 = arith.constant 0 : index
      %54 = vector.load %arg3[%c0_33, %c0_34] : memref<1x128xi32, #tpu.memory_space<vmem>>, vector<1x128xi32>
      %55 = vector.broadcast %54 : vector<1x128xi32> to vector<128x128xi32>
      %56 = arith.cmpi eq, %46, %55 : vector<128x128xi32>
      %57 = arith.extui %56 : vector<128x128xi1> to vector<128x128xi32>
      %58 = arith.sitofp %57 : vector<128x128xi32> to vector<128x128xf32>
      %59 = arith.truncf %58 : vector<128x128xf32> to vector<128x128xbf16>
      %c0_35 = arith.constant 0 : index
      %c0_36 = arith.constant 0 : index
      %60 = vector.load %arg11[%c0_35, %c0_36] : memref<128x128xbf16, #tpu.memory_space<vmem>>, vector<128x128xbf16>
      tpu.vector_store %arg11[%c0_35, %c0_36], %59 {strides = array<i32>} : memref<128x128xbf16, #tpu.memory_space<vmem>>, vector<128x128xbf16>,
    } else {
    }
    %c0 = arith.constant 0 : index
    %c0_1 = arith.constant 0 : index
    %3 = vector.load %arg9[%c0, %c0_1] : memref<128x128xf32, #tpu.memory_space<vmem>>, vector<128x128xf32>
    %c0_2 = arith.constant 0 : index
    %c0_3 = arith.constant 0 : index
    %c0_4 = arith.constant 0 : index
    %4 = vector.load %arg7[%c0_2, %c0_3, %c0_4] : memref<1x8x128xf32, #tpu.memory_space<vmem>>, vector<1x8x128xf32>
    %5 = vector.shape_cast %4 : vector<1x8x128xf32> to vector<8x128xf32>
    %6 = vector.extract_strided_slice %5 {offsets = [0, 0], sizes = [1, 128], strides = [1, 1]} : vector<8x128xf32> to vector<1x128xf32>
    %7 = vector.extract_strided_slice %5 {offsets = [1, 0], sizes = [1, 128], strides = [1, 1]} : vector<8x128xf32> to vector<1x128xf32>
    %8 = vector.extract_strided_slice %5 {offsets = [2, 0], sizes = [1, 128], strides = [1, 1]} : vector<8x128xf32> to vector<1x128xf32>
    %9 = vector.extract_strided_slice %5 {offsets = [3, 0], sizes = [1, 128], strides = [1, 1]} : vector<8x128xf32> to vector<1x128xf32>
    %10 = vector.extract_strided_slice %5 {offsets = [4, 0], sizes = [1, 128], strides = [1, 1]} : vector<8x128xf32> to vector<1x128xf32>
    %c0_5 = arith.constant 0 : index
    %c0_6 = arith.constant 0 : index
    %11 = vector.load %arg4[%c0_5, %c0_6] : memref<128x128xbf16, #tpu.memory_space<vmem>>, vector<128x128xbf16>
    %c0_7 = arith.constant 0 : index
    %c0_8 = arith.constant 0 : index
    %c0_9 = arith.constant 0 : index
    %12 = vector.load %arg5[%c0_7, %c0_8, %c0_9] : memref<1x128x128xbf16, #tpu.memory_space<vmem>>, vector<1x128x128xbf16>
    %13 = vector.shape_cast %12 : vector<1x128x128xbf16> to vector<128x128xbf16>
    %cst = arith.constant dense<0.000000e+00> : vector<128x128xf32>
    %14 = tpu.matmul %11, %13, %cst {dimension_numbers = #tpu.dot_dimension_numbers<[1], [0], [0], [1], [0, 0, 1, 1], [], []>} : vector<128x128xbf16>, vector<128x128xbf16>, vector<128x128xf32> -> vector<128x128xf32>
    %15 = vector.broadcast %6 : vector<1x128xf32> to vector<128x128xf32>
    %16 = arith.addf %14, %15 : vector<128x128xf32>
    %c0_10 = arith.constant 0 : index
    %c0_11 = arith.constant 0 : index
    %17 = vector.load %arg10[%c0_10, %c0_11] : memref<128x128xbf16, #tpu.memory_space<vmem>>, vector<128x128xbf16>
    %c0_12 = arith.constant 0 : index
    %c0_13 = arith.constant 0 : index
    %18 = vector.load %arg11[%c0_12, %c0_13] : memref<128x128xbf16, #tpu.memory_space<vmem>>, vector<128x128xbf16>
    %19 = arith.truncf %3 : vector<128x128xf32> to vector<128x128xbf16>
    %cst_14 = arith.constant dense<0.000000e+00> : vector<128x128xf32>
    %20 = tpu.matmul %17, %19, %cst_14 {dimension_numbers = #tpu.dot_dimension_numbers<[0], [0], [1], [1], [0, 1, 1, 1], [], []>} : vector<128x128xbf16>, vector<128x128xbf16>, vector<128x128xf32> -> vector<128x128xf32>
    %21 = arith.addf %20, %16 : vector<128x128xf32>
    %cst_15 = arith.constant 0.000000e+00 : f32
    %22 = vector.broadcast %cst_15 : f32 to vector<128x128xf32>
    %23 = arith.maximumf %21, %22 : vector<128x128xf32>
    %24 = arith.truncf %23 : vector<128x128xf32> to vector<128x128xbf16>
    %cst_16 = arith.constant dense<0.000000e+00> : vector<128x128xf32>
    %25 = tpu.matmul %18, %24, %cst_16 {dimension_numbers = #tpu.dot_dimension_numbers<[1], [0], [0], [1], [0, 0, 1, 1], [], []>} : vector<128x128xbf16>, vector<128x128xbf16>, vector<128x128xf32> -> vector<128x128xf32>
    %26 = vector.broadcast %8 : vector<1x128xf32> to vector<128x128xf32>
    %27 = arith.mulf %26, %3 : vector<128x128xf32>
    %28 = arith.addf %27, %25 : vector<128x128xf32>
    %c0_17 = arith.constant 0 : index
    %c0_18 = arith.constant 0 : index
    %c0_19 = arith.constant 0 : index
    %29 = vector.load %arg6[%c0_17, %c0_18, %c0_19] : memref<1x128x128xf32, #tpu.memory_space<vmem>>, vector<1x128x128xf32>
    %30 = vector.shape_cast %29 : vector<1x128x128xf32> to vector<128x128xf32>
    %cst_20 = arith.constant dense<0.000000e+00> : vector<128x128xf32>
    %31 = tpu.matmul %28, %30, %cst_20 {dimension_numbers = #tpu.dot_dimension_numbers<[1], [0], [0], [1], [0, 0, 1, 1], [], []>} : vector<128x128xf32>, vector<128x128xf32>, vector<128x128xf32> -> vector<128x128xf32>
    %32 = vector.broadcast %7 : vector<1x128xf32> to vector<128x128xf32>
    %33 = arith.addf %31, %32 : vector<128x128xf32>
    %34 = vector.broadcast %9 : vector<1x128xf32> to vector<128x128xf32>
    %35 = arith.mulf %33, %34 : vector<128x128xf32>
    %36 = vector.broadcast %10 : vector<1x128xf32> to vector<128x128xf32>
    %37 = arith.addf %35, %36 : vector<128x128xf32>
    %cst_21 = arith.constant 0.000000e+00 : f32
    %38 = vector.broadcast %cst_21 : f32 to vector<128x128xf32>
    %39 = arith.maximumf %37, %38 : vector<128x128xf32>
    %c0_22 = arith.constant 0 : index
    %c0_23 = arith.constant 0 : index
    %40 = vector.load %arg9[%c0_22, %c0_23] : memref<128x128xf32, #tpu.memory_space<vmem>>, vector<128x128xf32>
    tpu.vector_store %arg9[%c0_22, %c0_23], %39 {strides = array<i32>} : memref<128x128xf32, #tpu.memory_space<vmem>>, vector<128x128xf32>,
    %c2_i32 = arith.constant 2 : i32
    %41 = arith.cmpi eq, %arg0, %c2_i32 : i32
    %42 = arith.extui %41 : i1 to i32
    %c0_i32_24 = arith.constant 0 : i32
    %43 = arith.cmpi ne, %42, %c0_i32_24 : i32
    scf.if %43 {
      %c0_25 = arith.constant 0 : index
      %c0_26 = arith.constant 0 : index
      %44 = vector.load %arg8[%c0_25, %c0_26] : memref<128x128xf32, #tpu.memory_space<vmem>>, vector<128x128xf32>
      tpu.vector_store %arg8[%c0_25, %c0_26], %39 {strides = array<i32>} : memref<128x128xf32, #tpu.memory_space<vmem>>, vector<128x128xf32>,
    } else {
    }
    return
  }
  func.func @transform_0(%arg0: i32) -> (i32, i32) {
    %c0_i32 = arith.constant 0 : i32
    %c0_i32_0 = arith.constant 0 : i32
    %c0_i32_1 = arith.constant 0 : i32
    return %c0_i32, %c0_i32_0 : i32, i32
  }
  func.func @transform_1(%arg0: i32) -> (i32, i32) {
    %c0_i32 = arith.constant 0 : i32
    %c0_i32_0 = arith.constant 0 : i32
    %c0_i32_1 = arith.constant 0 : i32
    return %c0_i32, %c0_i32_0 : i32, i32
  }
  func.func @transform_2(%arg0: i32) -> (i32, i32) {
    %c0_i32 = arith.constant 0 : i32
    %c0_i32_0 = arith.constant 0 : i32
    %c0_i32_1 = arith.constant 0 : i32
    return %c0_i32, %c0_i32_0 : i32, i32
  }
  func.func @transform_3(%arg0: i32) -> (i32, i32) {
    %c0_i32 = arith.constant 0 : i32
    %c0_i32_0 = arith.constant 0 : i32
    %c0_i32_1 = arith.constant 0 : i32
    return %c0_i32, %c0_i32_0 : i32, i32
  }
  func.func @transform_4(%arg0: i32) -> (i32, i32, i32) {
    %c0_i32 = arith.constant 0 : i32
    %c0_i32_0 = arith.constant 0 : i32
    %c0_i32_1 = arith.constant 0 : i32
    return %arg0, %c0_i32, %c0_i32_0 : i32, i32, i32
  }
  func.func @transform_5(%arg0: i32) -> (i32, i32, i32) {
    %c0_i32 = arith.constant 0 : i32
    %c0_i32_0 = arith.constant 0 : i32
    %c0_i32_1 = arith.constant 0 : i32
    return %arg0, %c0_i32, %c0_i32_0 : i32, i32, i32
  }
  func.func @transform_6(%arg0: i32) -> (i32, i32, i32) {
    %c0_i32 = arith.constant 0 : i32
    %c0_i32_0 = arith.constant 0 : i32
    %c0_i32_1 = arith.constant 0 : i32
    return %arg0, %c0_i32, %c0_i32_0 : i32, i32, i32
  }
  func.func @transform_7(%arg0: i32) -> (i32, i32) {
    %c0_i32 = arith.constant 0 : i32
    %c0_i32_0 = arith.constant 0 : i32
    %c0_i32_1 = arith.constant 0 : i32
    return %c0_i32, %c0_i32_0 : i32, i32
  }
}

</mosaic_0001>

<bundles_post_ra>
// kernel: tpu_custom_call.1
= control target key start
LH: loop header
LB: loop body
LE: loop exit
PB: predicated region body
PF: predicated region fallthrough
CT: control target
= control target key end

     0   :  { %s2862_s0 = inlined_call_operand.hbm [shape: f32[128,128], index: 0, kind: input, shape index: {}]   ;;  %s2863_s1 = inlined_call_operand.vmem [shape: s32[1,128], index: 1, kind: input, shape index: {}]   ;;  %s2864_s2 = inlined_call_operand.vmem [shape: s32[1,128], index: 2, kind: input, shape index: {}]   ;;  %s2865_s3 = inlined_call_operand.hbm [shape: bf16[128,128], index: 3, kind: input, shape index: {}]   ;;  %s2866_s4 = inlined_call_operand.hbm [shape: bf16[3,128,128], index: 4, kind: input, shape index: {}]   ;;  %s2867_s5 = inlined_call_operand.hbm [shape: f32[3,128,128], index: 5, kind: input, shape index: {}]   ;;  %s2868_s6 = inlined_call_operand.hbm [shape: f32[3,8,128], index: 6, kind: input, shape index: {}]   ;;  %s2869_s7 = inlined_call_operand.hbm [shape: f32[128,128], index: 7, kind: output, shape index: {}]  }
   0x1   :  { %2885 = sst [smem:[#allocation20_spill]] %s2862_s0 }
   0x2   :  { %2886 = sst [smem:[#allocation21_spill]] %s2866_s4 }
   0x3   :  { %2887 = sst [smem:[#allocation22_spill]] %s2867_s5 }
   0x4   :  { %12 = vsyncpa [#allocation6], 0 }
   0x5   :  { %13 = vsyncpa [#allocation9], 0 }
   0x6   :  { %14 = vsyncpa [#allocation7], 0  ;;  %s2236_s24 = smov 0   ;;  %s2238_s25 = smov 0  }
   0x7   :  { %s2240_s26 = smov 0   ;;  %s2242_s27 = smov 0  }
   0x8 LB: > { %2888 = sst [smem:[#allocation18_spill]] %s2177_s26  ;;  %s2255_s28 = sadd.s32 4294967295, %s2181_s27   ;;  %s2181_s27 = sphi %s2242_s27, %s2920_s27   ;;  %s2177_s26 = sphi %s2240_s26, %s2917_s26   ;;  %s2173_s25 = sphi %s2238_s25, %s2919_s25   ;;  %s2169_s24 = sphi %s2236_s24, %s2918_s24  }
   0x9   : > { %s2258_s29 = sadd.s32 1, %s2181_s27   ;;  %s111_s8 = sadd.s32 1, %s2177_s26 }
   0xa   : > { %s108_s30 = ssub.s32 %s2181_s27, %s2258_s29  ;;  %p118_p1 = scmp.ne.s32.totalorder %s2177_s26, %s2173_s25 }
   0xb   : > { %p109_p0 = scmp.eq.s32.totalorder %s108_s30, 0  ;;  %p119_p2 = scmp.eq.s32.totalorder %s2181_s27, 0 }
   0xc   : > { %p124_p3 = scmp.ne.s32.totalorder %s2173_s25, %s2169_s24  ;;  %p2870_p5 = scmp.eq.s32.totalorder %s2255_s28, 0 }
   0xd   : > { %s2268_s9 = scalar_select %p109_p0, %s2177_s26, %s111_s8  }
   0xe   : > { %p2270_p4 = por %p119_p2, %p118_p1  ;;  %p1491_p6 = scmp.ge.s32.totalorder %s2181_s27, 1 }
   0xf   : > { %2889 = sst [smem:[#allocation19_spill]] %s2268_s9  ;;  %p208_p7 = scmp.lt.s32.totalorder %s2181_s27, 4 }
  0x10   : > { %p2279_p8 = por %p2870_p5, %p124_p3  ;;  %s2183_s13 = smov [#allocation5]  }
  0x11   : > { %p2284_p10 = pnand %p1491_p6, %p208_p7  ;;  %s220_s14 = sshll.u32 %s2183_s13, 4  ;;  %s221_s14 = int_to_ptr.vmem [resolvable:$true] %s220_s14 }
  0x12   : > { %s2891_s11 = scalar_select %p2279_p8, 1, 0 }
  0x13   : > { %s2892_s12 = scalar_select %p2284_p10, 1, 0 }
  0x14   : > { %p1881_p11 = pneg %p2284_p10  ;;  %p1900_p13 = scmp.lt.s32.totalorder %s2181_s27, 3 }
  0x15   : > { %s2895_s0 = sld [smem:[#allocation20_spill]] }
  0x16   : > { %p2292_p12 = pnand %p1881_p11, %p2870_p5  ;;  %p2299_p0 = pnand %p1900_p13, %p2270_p4 }
  0x18   : > { %s2893_s15 = scalar_select %p2292_p12, 1, 0 }
  0x19   : > { %s2894_s16 = scalar_select %p2299_p0, 1, 0 }
  0x1a   : > { %p2875_p2 = pneg %p2292_p12 }
  0x1b   : > { %s1963_s19 = scalar_lea.hbm %s2895_s0, 2048 }
  0x1c   : > { %p1964_p1 = scmp.ne.s32.totalorder %s2895_s0, %s1963_s19  ;;  %p1970_p4 = scmp.lt.u32.totalorder %s1963_s19, %s2895_s0 }
  0x1e   : > { %p1966_p3 = pnand %p2875_p2, %p1964_p1 }
  0x20   : > { %p1967_p6 = pneg %p1966_p3 }
  0x22   : > { %p1972_p7 = pnand %p1970_p4, %p1967_p6 }
  0x24   : > { %1975 = shalt.err (!%p1972_p7)
}
  0x25   : > { %s1976_s24 = scalar_lea.vmem %s221_s14, 2048  ;;  %p1984_p5 = scmp.lt.s32.totalorder %s221_s14, %s221_s14 }
  0x26   : > { %p1977_p11 = scmp.ne.s32.totalorder %s221_s14, %s1976_s24  ;;  %p1985_p8 = scmp.lt.s32.totalorder %s1976_s24, %s1976_s24 }
  0x28   : > { %p1979_p13 = pnand %p1977_p11, %p2875_p2  ;;  %p1986_p10 = por %p1985_p8, %p1984_p5 }
  0x2a   : > { %p1980_p9 = pneg %p1979_p13 }
  0x2c   : > { %p1987_p0 = pnand %p1986_p10, %p1980_p9 }
  0x2e   : > { %1990 = shalt.err (!%p1987_p0)
}
  0x2f   : > { %s2874_s30 = smov 128   ;;  %s2878_s8 = smov 8  }
  0x30   : > { %1884 = dma.hbm_to_vmem [thread:$0]  (!%p2292_p12), %s2895_s0, 2048, %s221_s14, [#allocation6], %s2874_s30, %s2874_s30, %s2878_s8  }
  0x31   : > { %s253_s17 = sand.u32 1, %s2181_s27   ;;  %s2330_s18 = sand.u32 1, %s2177_s26  }
  0x32   : > { %s1495_s19 = sshll.u32 %s2330_s18, 6  ;;  %s1565_s20 = sshll.u32 %s2181_s27, 10 }
  0x33   : > { %s2896_s4 = sld [smem:[#allocation21_spill]]  ;;  %s257_s24 = scalar_lea.vmem [#allocation10], %s1495_s19 }
  0x34   : > { %s264_s9 = sshll.u32 %s257_s24, 4  ;;  %s1498_s10 = sshll.u32 %s2330_s18, 7  ;;  %s2340_s9 = int_to_ptr.vmem [resolvable:$true] %s264_s9 }
  0x35   : > { %s2342_s14 = scalar_lea.sflag [#allocation6], %s253_s17  ;;  %p2897_p8 = scmp.ne.s32.totalorder %s2894_s16, 0 }
  0x37   : > { %p2348_p9 = pneg %p2897_p8 }
  0x39   : > { %s2337_s23 = scalar_lea.hbm %s2896_s4, %s1565_s20  ;;  %s1996_s19 = scalar_lea.hbm %s2896_s4, 3072 }
  0x3a   : > { %s1991_s13 = scalar_lea.hbm %s2337_s23, 1024  ;;  %p1997_p1 = scmp.lt.u32.totalorder %s2337_s23, %s2896_s4 }
  0x3b   : > { %p1992_p5 = scmp.ne.s32.totalorder %s2337_s23, %s1991_s13  ;;  %p1998_p3 = scmp.lt.u32.totalorder %s1996_s19, %s1991_s13 }
  0x3c   : > { %s2898_s30 = scalar_select %p2348_p9, 1, 0 }
  0x3d   : > { %p1994_p10 = pnand %p2348_p9, %p1992_p5  ;;  %p1999_p6 = por %p1998_p3, %p1997_p1 }
  0x3e   : > { %p2000_p4 = scmp.lt.u32.totalorder %s1991_s13, %s2337_s23 }
  0x3f   : > { %p1995_p0 = pneg %p1994_p10 }
  0x40   : > { %p2001_p7 = por %p2000_p4, %p1999_p6 }
  0x42   : > { %p2002_p11 = pnand %p2001_p7, %p1995_p0 }
  0x44   : > { %2005 = shalt.err (!%p2002_p11)
}
  0x45   : > { %s2006_s17 = scalar_lea.vmem %s2340_s9, 1024  ;;  %s2186_s20 = smov [#allocation10]  }
  0x46   : > { %p2007_p13 = scmp.ne.s32.totalorder %s2340_s9, %s2006_s17  ;;  %s2011_s21 = sshll.u32 %s2186_s20, 4  ;;  %s2012_s21 = int_to_ptr.vmem [resolvable:$false] %s2011_s21 }
  0x47   : > { %s2013_s22 = scalar_lea.vmem %s2012_s21, 2048  ;;  %p2014_p2 = scmp.lt.s32.totalorder %s2340_s9, %s2012_s21 }
  0x48   : > { %p2009_p5 = pnand %p2007_p13, %p2348_p9  ;;  %p2015_p12 = scmp.lt.s32.totalorder %s2013_s22, %s2006_s17 }
  0x4a   : > { %p2010_p10 = pneg %p2009_p5  ;;  %p2016_p1 = por %p2015_p12, %p2014_p2 }
  0x4c   : > { %p2017_p3 = pnand %p2016_p1, %p2010_p10 }
  0x4e   : > { %2020 = shalt.err (!%p2017_p3)
}
  0x4f   : > { %s2879_s13 = smov 64   ;;  %s2880_s19 = smov 4  }
  0x50   : > { %1891 = dma.hbm_to_vmem [thread:$0]  (!%p2897_p8), %s2337_s23, 1024, %s2340_s9, %s2342_s14, %s2879_s13, %s2879_s13, %s2880_s19  }
  0x51   : > { %s1566_s24 = sshll.u32 %s2181_s27, 11  ;;  %s278_s17 = scalar_lea.vmem [#allocation11], %s1498_s10 }
  0x52   : > { %s285_s20 = sshll.u32 %s278_s17, 4  ;;  %s2899_s5 = sld [smem:[#allocation22_spill]]  ;;  %s2383_s20 = int_to_ptr.vmem [resolvable:$true] %s285_s20 }
  0x58   : > { %s2381_s8 = scalar_lea.hbm %s2899_s5, %s1566_s24  ;;  %s2026_s10 = scalar_lea.hbm %s2899_s5, 6144 }
  0x59   : > { %s2021_s0 = scalar_lea.hbm %s2381_s8, 2048  ;;  %p2027_p6 = scmp.lt.u32.totalorder %s2381_s8, %s2899_s5 }
  0x5a   : > { %p2022_p12 = scmp.ne.s32.totalorder %s2381_s8, %s2021_s0  ;;  %p2028_p4 = scmp.lt.u32.totalorder %s2026_s10, %s2021_s0 }
  0x5b   : > { %p2030_p11 = scmp.lt.u32.totalorder %s2021_s0, %s2381_s8 }
  0x5c   : > { %p2024_p2 = pnand %p2022_p12, %p2348_p9  ;;  %p2029_p7 = por %p2028_p4, %p2027_p6 }
  0x5e   : > { %p2025_p0 = pneg %p2024_p2  ;;  %p2031_p13 = por %p2030_p11, %p2029_p7 }
  0x60   : > { %p2032_p5 = pnand %p2031_p13, %p2025_p0 }
  0x62   : > { %2035 = shalt.err (!%p2032_p5)
}
  0x63   : > { %s2036_s24 = scalar_lea.vmem %s2383_s20, 2048  ;;  %s2189_s21 = smov [#allocation11]  }
  0x64   : > { %p2037_p10 = scmp.ne.s32.totalorder %s2383_s20, %s2036_s24  ;;  %s2041_s22 = sshll.u32 %s2189_s21, 4  ;;  %s2042_s22 = int_to_ptr.vmem [resolvable:$false] %s2041_s22 }
  0x65   : > { %s2043_s13 = scalar_lea.vmem %s2042_s22, 4096  ;;  %p2044_p12 = scmp.lt.s32.totalorder %s2383_s20, %s2042_s22 }
  0x66   : > { %p2039_p1 = pnand %p2037_p10, %p2348_p9  ;;  %p2045_p2 = scmp.lt.s32.totalorder %s2043_s13, %s2036_s24 }
  0x68   : > { %p2040_p3 = pneg %p2039_p1  ;;  %p2046_p6 = por %p2045_p2, %p2044_p12 }
  0x6a   : > { %p2047_p4 = pnand %p2046_p6, %p2040_p3 }
  0x6c   : > { %2050 = shalt.err (!%p2047_p4)
}
  0x6d   : > { %s2900_s0 = smov 8   ;;  %s2901_s9 = smov 128  }
  0x6e   : > { %1894 = dma.hbm_to_vmem [thread:$0]  (!%p2897_p8), %s2381_s8, 2048, %s2383_s20, %s2342_s14, %s2901_s9, %s2901_s9, %s2900_s0  }
  0x6f   : > { %s1501_s23 = sshll.u32 %s2330_s18, 3  ;;  %s2190_s10 = smov [#allocation8]  }
  0x70   : > { %s239_s17 = sshll.u32 %s2190_s10, 4  ;;  %s1502_s24 = sshll.u32 %s2181_s27, 7  ;;  %s240_s17 = int_to_ptr.vmem [resolvable:$true] %s239_s17 }
  0x71   : > { %s2051_s13 = scalar_lea.hbm %s2865_s3, 1024  ;;  %p2902_p7 = scmp.ne.s32.totalorder %s2893_s15, 0 }
  0x72   : > { %p2052_p0 = scmp.ne.s32.totalorder %s2865_s3, %s2051_s13  ;;  %p2058_p10 = scmp.lt.u32.totalorder %s2051_s13, %s2865_s3 }
  0x73   : > { %p2903_p11 = pneg %p2902_p7 }
  0x75   : > { %p2054_p13 = pnand %p2052_p0, %p2903_p11 }
  0x77   : > { %p2055_p5 = pneg %p2054_p13 }
  0x79   : > { %p2060_p1 = pnand %p2058_p10, %p2055_p5 }
  0x7b   : > { %2063 = shalt.err (!%p2060_p1)
}
  0x7c   : > { %s2064_s8 = scalar_lea.vmem %s240_s17, 1024  ;;  %p2904_p12 = pmov %p2903_p11 }
  0x7d   : > { %p2065_p3 = scmp.ne.s32.totalorder %s240_s17, %s2064_s8  ;;  %p2072_p4 = scmp.lt.s32.totalorder %s240_s17, %s240_s17 }
  0x7e   : > { %p2073_p8 = scmp.lt.s32.totalorder %s2064_s8, %s2064_s8 }
  0x7f   : > { %p2067_p2 = pnand %p2065_p3, %p2904_p12 }
  0x80   : > { %p2074_p9 = por %p2073_p8, %p2072_p4 }
  0x81   : > { %p2068_p6 = pneg %p2067_p2 }
  0x83   : > { %p2075_p0 = pnand %p2074_p9, %p2068_p6 }
  0x85   : > { %2078 = shalt.err (!%p2075_p0)
}
  0x86   : > { %s2905_s4 = smov 4   ;;  %s2906_s27 = smov 64  }
  0x87   : > { %1887 = dma.hbm_to_vmem [thread:$0]  (!%p2902_p7), %s2865_s3, 1024, %s240_s17, [#allocation9], %s2906_s27, %s2906_s27, %s2905_s4  }
  0x88   : > { %s2438_s20 = scalar_lea.hbm %s2868_s6, %s1502_s24  ;;  %s299_s0 = scalar_lea.vmem [#allocation12], %s1501_s23 }
  0x89   : > { %s306_s9 = sshll.u32 %s299_s0, 4  ;;  %s2079_s15 = scalar_lea.hbm %s2438_s20, 128  ;;  %s307_s9 = int_to_ptr.vmem [resolvable:$true] %s306_s9 }
  0x8a   : > { %p2080_p8 = scmp.ne.s32.totalorder %s2438_s20, %s2079_s15  ;;  %p2907_p9 = scmp.ne.s32.totalorder %s2898_s30, 0 }
  0x8b   : > { %s2084_s17 = scalar_lea.hbm %s2868_s6, 384  ;;  %p2085_p7 = scmp.lt.u32.totalorder %s2438_s20, %s2868_s6 }
  0x8c   : > { %p2082_p11 = pnand %p2080_p8, %p2907_p9  ;;  %p2086_p5 = scmp.lt.u32.totalorder %s2084_s17, %s2079_s15 }
  0x8d   : > { %p2088_p1 = scmp.lt.u32.totalorder %s2079_s15, %s2438_s20 }
  0x8e   : > { %p2083_p13 = pneg %p2082_p11  ;;  %p2087_p10 = por %p2086_p5, %p2085_p7 }
  0x90   : > { %p2089_p3 = por %p2088_p1, %p2087_p10 }
  0x92   : > { %p2090_p12 = pnand %p2089_p3, %p2083_p13 }
  0x94   : > { %2093 = shalt.err (!%p2090_p12)
}
  0x95   : > { %s2094_s23 = scalar_lea.vmem %s307_s9, 128  ;;  %s2191_s24 = smov [#allocation12]  }
  0x96   : > { %p2095_p2 = scmp.ne.s32.totalorder %s307_s9, %s2094_s23  ;;  %s2099_s8 = sshll.u32 %s2191_s24, 4  ;;  %s2100_s8 = int_to_ptr.vmem [resolvable:$false] %s2099_s8 }
  0x97   : > { %s2101_s4 = scalar_lea.vmem %s2100_s8, 256  ;;  %p2102_p0 = scmp.lt.s32.totalorder %s307_s9, %s2100_s8 }
  0x98   : > { %p2097_p6 = pnand %p2095_p2, %p2907_p9  ;;  %p2103_p8 = scmp.lt.s32.totalorder %s2101_s4, %s2094_s23 }
  0x9a   : > { %p2098_p4 = pneg %p2097_p6  ;;  %p2104_p11 = por %p2103_p8, %p2102_p0 }
  0x9c   : > { %p2105_p5 = pnand %p2104_p11, %p2098_p4 }
  0x9e   : > { %2108 = shalt.err (!%p2105_p5)
}
  0x9f   : > { %p2908_p7 = scmp.ne.s32.totalorder %s2894_s16, 0  ;;  %p2909_p13 = scmp.ne.s32.totalorder %s2892_s12, 0 }
  0xa0   : > { %p2910_p9 = scmp.eq.s32.totalorder (!%p2909_p13), %s2255_s28, 0 }
  0xa1   : > { %1897 = dma.hbm_to_vmem [thread:$0]  (!%p2908_p7), %s2438_s20, 128, %s307_s9, %s2342_s14  }
  0xa2   : > { %315 = sbr.rel (%p2909_p13) target bundleno = 1068 (0x42c), region = 48 }
  0xa9   : > { %2152 = dma.done.wait (%p2910_p9), [#allocation6], 2048   ;;  %p2911_p10 = pmov %p2910_p9 }
  0xaa   : > { %p2912_p1 = pmov %p2910_p9 }
  0xab   : > { %2154 = vsyncadd (%p2911_p10), [#allocation6], 4294965248 }
  0xac   : > { %2156 = dma.done.wait (%p2912_p1), [#allocation9], 1024   ;;  %p2913_p3 = pmov %p2912_p1 }
  0xad   : > { %s325_s16 = sand.u32 1, %s2255_s28   ;;  %s327_s30 = sand.u32 1, %s2173_s25  }
  0xae   : > { %2158 = vsyncadd (%p2913_p3), [#allocation9], 4294966272  ;;  %s1506_s14 = sshll.u32 %s327_s30, 6  ;;  %s326_s12 = scalar_lea.sflag [#allocation6], %s325_s16 }
  0xaf   : > { %s2470_s27 = scalar_lea.vmem [#allocation10], %s1506_s14  ;;  %p2914_p12 = scmp.ne.s32.totalorder %s2891_s11, 0 }
  0xb1   : > { %2160 = dma.done.wait (%p2914_p12), %s326_s12, 3200  }
  0xb2   : > { %2162 = vsyncadd (%p2914_p12), %s326_s12, 4294964096  ;;  %s1507_s5 = sshll.u32 %s327_s30, 7  ;;  %s1508_s26 = sshll.u32 %s327_s30, 3 }
  0xb3   : > { %s2476_s18 = scalar_lea.vmem [#allocation11], %s1507_s5  ;;  %s2478_s19 = scalar_lea.vmem [#allocation12], %s1508_s26 }
  0xb4   : > { %p2915_p2 = scmp.ne.s32.totalorder %s2255_s28, 0 }
  0xb5   : > { %v388_v0 = vld [vmem:[#allocation5] sm:$0xff] (!%p2915_p2)  ;;  %v389_v1 = vld [vmem:[#allocation5 + $0x8] sm:$0xff] (!%p2915_p2)  ;;  %v390_v2 = vld [vmem:[#allocation5 + $0x10] sm:$0xff] (!%p2915_p2)  ;;  %v420_v3 = vlaneseq (!%p2915_p2)  ;;  %v2192_v25 = vmov (!%p2915_p2), 0.0  }
  0xb6   : > { %387 = sbr.rel (%p2915_p2) target bundleno = 214 (0xd6), region = 72  ;;  %404 = vst [vmem:[#allocation2] sm:$0xff] (!%p2915_p2), %v388_v0  ;;  %405 = vst [vmem:[#allocation2 + $0x8] sm:$0xff] (!%p2915_p2), %v389_v1  ;;  %v391_v4 = vld [vmem:[#allocation5 + $0x18] sm:$0xff] (!%p2915_p2)  ;;  %v392_v5 = vld [vmem:[#allocation5 + $0x20] sm:$0xff] (!%p2915_p2) }
  0xb7   : > { %406 = vst [vmem:[#allocation2 + $0x10] sm:$0xff] (!%p2915_p2), %v390_v2  ;;  %v393_v6 = vld [vmem:[#allocation5 + $0x28] sm:$0xff] (!%p2915_p2)  ;;  %407 = vst [vmem:[#allocation2 + $0x18] sm:$0xff] (!%p2915_p2), %v391_v4  ;;  %v394_v7 = vld [vmem:[#allocation5 + $0x30] sm:$0xff] (!%p2915_p2)  ;;  %v2482_v10 = vshrl.u32 (!%p2915_p2), %v420_v3, 7 }
  0xb8   : > { %408 = vst [vmem:[#allocation2 + $0x20] sm:$0xff] (!%p2915_p2), %v392_v5  ;;  %409 = vst [vmem:[#allocation2 + $0x28] sm:$0xff] (!%p2915_p2), %v393_v6  ;;  %v395_v8 = vld [vmem:[#allocation5 + $0x38] sm:$0xff] (!%p2915_p2)  ;;  %v396_v9 = vld [vmem:[#allocation5 + $0x40] sm:$0xff] (!%p2915_p2) }
  0xb9   : > { %410 = vst [vmem:[#allocation2 + $0x30] sm:$0xff] (!%p2915_p2), %v394_v7  ;;  %411 = vst [vmem:[#allocation2 + $0x38] sm:$0xff] (!%p2915_p2), %v395_v8  ;;  %v397_v11 = vld [vmem:[#allocation5 + $0x48] sm:$0xff] (!%p2915_p2)  ;;  %v398_v12 = vld [vmem:[#allocation5 + $0x50] sm:$0xff] (!%p2915_p2)  ;;  %v2485_v17 = vadd.s32 (!%p2915_p2), 8, %v2482_v10  ;;  %v2488_v18 = vadd.s32 (!%p2915_p2), 16, %v2482_v10 }
  0xba   : > { %412 = vst [vmem:[#allocation2 + $0x40] sm:$0xff] (!%p2915_p2), %v396_v9  ;;  %v399_v13 = vld [vmem:[#allocation5 + $0x58] sm:$0xff] (!%p2915_p2)  ;;  %413 = vst [vmem:[#allocation2 + $0x48] sm:$0xff] (!%p2915_p2), %v397_v11  ;;  %v400_v14 = vld [vmem:[#allocation5 + $0x60] sm:$0xff] (!%p2915_p2)  ;;  %v2491_v19 = vadd.s32 (!%p2915_p2), 24, %v2482_v10  ;;  %v2499_v22 = vadd.s32 (!%p2915_p2), 32, %v2482_v10 }
  0xbb   : > { %414 = vst [vmem:[#allocation2 + $0x50] sm:$0xff] (!%p2915_p2), %v398_v12  ;;  %415 = vst [vmem:[#allocation2 + $0x58] sm:$0xff] (!%p2915_p2), %v399_v13  ;;  %v401_v15 = vld [vmem:[#allocation5 + $0x68] sm:$0xff] (!%p2915_p2)  ;;  %v402_v16 = vld [vmem:[#allocation5 + $0x70] sm:$0xff] (!%p2915_p2)  ;;  %v2502_v23 = vadd.s32 (!%p2915_p2), 40, %v2482_v10  ;;  %v2505_v24 = vadd.s32 (!%p2915_p2), 48, %v2482_v10 }
  0xbc   : > { %416 = vst [vmem:[#allocation2 + $0x60] sm:$0xff] (!%p2915_p2), %v400_v14  ;;  %417 = vst [vmem:[#allocation2 + $0x68] sm:$0xff] (!%p2915_p2), %v401_v15  ;;  %v403_v20 = vld [vmem:[#allocation5 + $0x78] sm:$0xff] (!%p2915_p2)  ;;  %v2496_v21 = vld [vmem:[%s2863_s1] ss:$0 sm:$0xff] (!%p2915_p2)  ;;  %v2526_v34 = vadd.s32 (!%p2915_p2), 56, %v2482_v10 }
  0xbd   : > { %418 = vst [vmem:[#allocation2 + $0x70] sm:$0xff] %v402_v16  ;;  %419 = vst [vmem:[#allocation2 + $0x78] sm:$0xff] %v403_v20  ;;  %vm442_vm0 = vcmp.eq.s32.totalorder %v2482_v10, %v2496_v21  ;;  %vm443_vm1 = vcmp.eq.s32.totalorder %v2485_v17, %v2496_v21  ;;  %vm444_vm2 = vcmp.eq.s32.totalorder %v2488_v18, %v2496_v21  ;;  %v429_v37 = vadd.s32 64, %v2482_v10  ;;  %v2560_v47 = vld [vmem:[%s2864_s2] ss:$0 sm:$0xff] }
  0xbe   : > { %vm445_vm3 = vcmp.eq.s32.totalorder %v2491_v19, %v2496_v21  ;;  %v1511_v26 = vsel %vm442_vm0, 1.0, %v2192_v25  ;;  %v1512_v27 = vsel %vm443_vm1, 1.0, %v2192_v25  ;;  %v1513_v28 = vsel %vm444_vm2, 1.0, %v2192_v25 }
  0xbf   : > { %v1514_v29 = vsel %vm445_vm3, 1.0, %v2192_v25  ;;  %v490_v30 = vpack.c.bf16 %v1512_v27, %v1511_v26  ;;  %vm446_vm4 = vcmp.eq.s32.totalorder %v2499_v22, %v2496_v21  ;;  %vm447_vm5 = vcmp.eq.s32.totalorder %v2502_v23, %v2496_v21 }
  0xc0   : > { %v491_v31 = vpack.c.bf16 %v1514_v29, %v1513_v28  ;;  %v1515_v32 = vsel %vm446_vm4, 1.0, %v2192_v25  ;;  %v1516_v33 = vsel %vm447_vm5, 1.0, %v2192_v25  ;;  %vm448_vm6 = vcmp.eq.s32.totalorder %v2505_v24, %v2496_v21 }
  0xc1   : > { %498 = vst [vmem:[#allocation3] sm:$0xff] %v490_v30  ;;  %v492_v35 = vpack.c.bf16 %v1516_v33, %v1515_v32  ;;  %v1517_v36 = vsel %vm448_vm6, 1.0, %v2192_v25  ;;  %v2533_v38 = vadd.s32 72, %v2482_v10  ;;  %vm449_vm7 = vcmp.eq.s32.totalorder %v2526_v34, %v2496_v21 }
  0xc2   : > { %499 = vst [vmem:[#allocation3 + $0x8] sm:$0xff] %v491_v31  ;;  %v2538_v39 = vadd.s32 80, %v2482_v10  ;;  %v2541_v40 = vadd.s32 88, %v2482_v10  ;;  %v2544_v41 = vadd.s32 96, %v2482_v10  ;;  %v1518_v42 = vsel %vm449_vm7, 1.0, %v2192_v25 }
  0xc3   : > { %500 = vst [vmem:[#allocation3 + $0x10] sm:$0xff] %v492_v35  ;;  %vm450_vm8 = vcmp.eq.s32.totalorder %v429_v37, %v2496_v21  ;;  %vm451_vm9 = vcmp.eq.s32.totalorder %v2533_v38, %v2496_v21  ;;  %v2551_v43 = vadd.s32 104, %v2482_v10  ;;  %v493_v44 = vpack.c.bf16 %v1518_v42, %v1517_v36 }
  0xc4   : > { %v1519_v45 = vsel %vm450_vm8, 1.0, %v2192_v25  ;;  %v1520_v46 = vsel %vm451_vm9, 1.0, %v2192_v25  ;;  %vm452_vm10 = vcmp.eq.s32.totalorder %v2538_v39, %v2496_v21  ;;  %vm453_vm11 = vcmp.eq.s32.totalorder %v2541_v40, %v2496_v21 }
  0xc5   : > { %v494_v48 = vpack.c.bf16 %v1520_v46, %v1519_v45  ;;  %v1521_v49 = vsel %vm452_vm10, 1.0, %v2192_v25  ;;  %vm454_vm12 = vcmp.eq.s32.totalorder %v2544_v41, %v2496_v21  ;;  %501 = vst [vmem:[#allocation3 + $0x18] sm:$0xff] %v493_v44  ;;  %v1522_v50 = vsel %vm453_vm11, 1.0, %v2192_v25 }
  0xc6   : > { %vm455_vm13 = vcmp.eq.s32.totalorder %v2551_v43, %v2496_v21  ;;  %v1523_v51 = vsel %vm454_vm12, 1.0, %v2192_v25  ;;  %v435_v52 = vadd.s32 112, %v2482_v10  ;;  %v495_v53 = vpack.c.bf16 %v1522_v50, %v1521_v49 }
  0xc7   : > { %502 = vst [vmem:[#allocation3 + $0x20] sm:$0xff] %v494_v48  ;;  %v1524_v54 = vsel %vm455_vm13, 1.0, %v2192_v25  ;;  %v436_v55 = vadd.s32 120, %v2482_v10  ;;  %vm511_vm14 = vcmp.eq.s32.totalorder %v2482_v10, %v2560_v47  ;;  %vm512_vm0 = vcmp.eq.s32.totalorder %v2485_v17, %v2560_v47 }
  0xc8   : > { %v496_v56 = vpack.c.bf16 %v1524_v54, %v1523_v51  ;;  %vm456_vm15 = vcmp.eq.s32.totalorder %v435_v52, %v2496_v21  ;;  %v1528_v57 = vsel %vm511_vm14, 1.0, %v2192_v25  ;;  %503 = vst [vmem:[#allocation3 + $0x28] sm:$0xff] %v495_v53  ;;  %v1529_v59 = vsel %vm512_vm0, 1.0, %v2192_v25 }
  0xc9   : > { %vm457_vm1 = vcmp.eq.s32.totalorder %v436_v55, %v2496_v21  ;;  %v1525_v58 = vsel %vm456_vm15, 1.0, %v2192_v25  ;;  %vm513_vm2 = vcmp.eq.s32.totalorder %v2488_v18, %v2560_v47  ;;  %v559_v61 = vpack.c.bf16 %v1529_v59, %v1528_v57 }
  0xca   : > { %504 = vst [vmem:[#allocation3 + $0x30] sm:$0xff] %v496_v56  ;;  %v1526_v60 = vsel %vm457_vm1, 1.0, %v2192_v25  ;;  %vm514_vm3 = vcmp.eq.s32.totalorder %v2491_v19, %v2560_v47  ;;  %v1530_v62 = vsel %vm513_vm2, 1.0, %v2192_v25  ;;  %vm515_vm4 = vcmp.eq.s32.totalorder %v2499_v22, %v2560_v47 }
  0xcb   : > { %v497_v63 = vpack.c.bf16 %v1526_v60, %v1525_v58  ;;  %v1531_v0 = vsel %vm514_vm3, 1.0, %v2192_v25  ;;  %vm516_vm5 = vcmp.eq.s32.totalorder %v2502_v23, %v2560_v47  ;;  %567 = vst [vmem:[#allocation4] sm:$0xff] %v559_v61  ;;  %v1532_v2 = vsel %vm515_vm4, 1.0, %v2192_v25 }
  0xcc   : > { %v560_v1 = vpack.c.bf16 %v1531_v0, %v1530_v62  ;;  %v1533_v3 = vsel %vm516_vm5, 1.0, %v2192_v25  ;;  %vm517_vm6 = vcmp.eq.s32.totalorder %v2505_v24, %v2560_v47  ;;  %vm518_vm7 = vcmp.eq.s32.totalorder %v2526_v34, %v2560_v47 }
  0xcd   : > { %505 = vst [vmem:[#allocation3 + $0x38] sm:$0xff] %v497_v63  ;;  %v561_v4 = vpack.c.bf16 %v1533_v3, %v1532_v2  ;;  %v1534_v5 = vsel %vm517_vm6, 1.0, %v2192_v25  ;;  %vm519_vm8 = vcmp.eq.s32.totalorder %v429_v37, %v2560_v47  ;;  %v1535_v6 = vsel %vm518_vm7, 1.0, %v2192_v25 }
  0xce   : > { %568 = vst [vmem:[#allocation4 + $0x8] sm:$0xff] %v560_v1  ;;  %vm520_vm9 = vcmp.eq.s32.totalorder %v2533_v38, %v2560_v47  ;;  %v1536_v7 = vsel %vm519_vm8, 1.0, %v2192_v25  ;;  %vm521_vm10 = vcmp.eq.s32.totalorder %v2538_v39, %v2560_v47  ;;  %v562_v8 = vpack.c.bf16 %v1535_v6, %v1534_v5 }
  0xcf   : > { %569 = vst [vmem:[#allocation4 + $0x10] sm:$0xff] %v561_v4  ;;  %v1537_v9 = vsel %vm520_vm9, 1.0, %v2192_v25  ;;  %vm522_vm11 = vcmp.eq.s32.totalorder %v2541_v40, %v2560_v47  ;;  %v1538_v10 = vsel %vm521_vm10, 1.0, %v2192_v25  ;;  %vm523_vm12 = vcmp.eq.s32.totalorder %v2544_v41, %v2560_v47 }
  0xd0   : > { %v563_v11 = vpack.c.bf16 %v1537_v9, %v1536_v7  ;;  %v1539_v12 = vsel %vm522_vm11, 1.0, %v2192_v25  ;;  %vm524_vm13 = vcmp.eq.s32.totalorder %v2551_v43, %v2560_v47  ;;  %570 = vst [vmem:[#allocation4 + $0x18] sm:$0xff] %v562_v8  ;;  %v1540_v14 = vsel %vm523_vm12, 1.0, %v2192_v25 }
  0xd1   : > { %v564_v13 = vpack.c.bf16 %v1539_v12, %v1538_v10  ;;  %v1541_v15 = vsel %vm524_vm13, 1.0, %v2192_v25  ;;  %vm525_vm14 = vcmp.eq.s32.totalorder %v435_v52, %v2560_v47  ;;  %vm526_vm15 = vcmp.eq.s32.totalorder %v436_v55, %v2560_v47 }
  0xd2   : > { %571 = vst [vmem:[#allocation4 + $0x20] sm:$0xff] %v563_v11  ;;  %v565_v16 = vpack.c.bf16 %v1541_v15, %v1540_v14  ;;  %v1542_v17 = vsel %vm525_vm14, 1.0, %v2192_v25  ;;  %v1543_v18 = vsel %vm526_vm15, 1.0, %v2192_v25 }
  0xd3   : > { %572 = vst [vmem:[#allocation4 + $0x28] sm:$0xff] %v564_v13  ;;  %v566_v19 = vpack.c.bf16 %v1543_v18, %v1542_v17 }
  0xd4   : > { %573 = vst [vmem:[#allocation4 + $0x30] sm:$0xff] %v565_v16 }
  0xd5   : > { %574 = vst [vmem:[#allocation4 + $0x38] sm:$0xff] %v566_v19 }
  0xd6 PF: > { %v821_v20 = vld [vmem:[#allocation3] sm:$0xff]  ;;  %v822_v21 = vld [vmem:[#allocation3 + $0x8] sm:$0xff]  ;;  %v823_v24 = vld [vmem:[#allocation3 + $0x10] sm:$0xff]  ;;  %v624_v13 = vlaneseq  ;;  %p1560_p6 = scmp.ne.s32.totalorder %s2255_s28, 2 }
  0xd7   : > { %845 = vxpose.xlu0.c.b16.start [1/8] %v821_v20, 128  ;;  %v1947_v22 = vld [vmem:[%s2470_s27] sm:$0xff]   ;;  %v1948_v23 = vld [vmem:[%s2470_s27 + $0x8] sm:$0xff]   ;;  %v1949_v25 = vld [vmem:[%s2470_s27 + $0x10] sm:$0xff]  }
  0xd8   : > { %1647 = vmatprep.subr.bf16.mxu0 %v1947_v22  ;;  %v824_v26 = vld [vmem:[#allocation3 + $0x18] sm:$0xff]  ;;  %v1955_v28 = vld [vmem:[#allocation8] sm:$0xff]   ;;  %v826_v31 = vld [vmem:[#allocation3 + $0x28] sm:$0xff]  ;;  %v2679_v14 = vshrl.u32 %v624_v13, 7 }
  0xd9   : > { %1648 = vmatpush3.bf16.msra.mxu0 %v1947_v22  ;;  %v1950_v27 = vld [vmem:[%s2470_s27 + $0x18] sm:$0xff]   ;;  %1663 = vmatprep.mubr.bf16.mxu0 %v1955_v28  ;;  %v825_v29 = vld [vmem:[#allocation3 + $0x20] sm:$0xff]  ;;  %v1952_v32 = vld [vmem:[%s2470_s27 + $0x28] sm:$0xff]  }
  0xda   : > { %1649 = vmatprep.subr.bf16.mxu0 %v1948_v23  ;;  %v1951_v30 = vld [vmem:[%s2470_s27 + $0x20] sm:$0xff]   ;;  %v827_v33 = vld [vmem:[#allocation3 + $0x30] sm:$0xff]  ;;  %v828_v35 = vld [vmem:[#allocation3 + $0x38] sm:$0xff]  ;;  %v626_v15 = vsub.s32 0, %v2679_v14 }
  0xdb   : > { %846 = vxpose.xlu0.c.b16.cont [2/8] %v822_v21, 128  ;;  %v1953_v34 = vld [vmem:[%s2470_s27 + $0x30] sm:$0xff]   ;;  %v1954_v36 = vld [vmem:[%s2470_s27 + $0x38] sm:$0xff]   ;;  %v2631_v37 = vld [vmem:[#allocation2] sm:$0xff] }
  0xdc   : > { %v2633_v38 = vld [vmem:[#allocation2 + $0x8] sm:$0xff]  ;;  %v2637_v40 = vld [vmem:[#allocation2 + $0x10] sm:$0xff]  ;;  %v2639_v41 = vld [vmem:[#allocation2 + $0x18] sm:$0xff] }
  0xdd   : > { %1650 = vmatpush3.bf16.msra.mxu0 %v1948_v23  ;;  %v837_v39 = vpack.c.bf16 %v2633_v38, %v2631_v37  ;;  %v1956_v42 = vld [vmem:[#allocation8 + $0x8] sm:$0xff]   ;;  %v1957_v43 = vld [vmem:[#allocation8 + $0x10] sm:$0xff]   ;;  %v838_v44 = vpack.c.bf16 %v2639_v41, %v2637_v40  ;;  %v2643_v45 = vld [vmem:[#allocation2 + $0x20] sm:$0xff] }
  0xde   : > { %1651 = vmatprep.subr.bf16.mxu0 %v1949_v25  ;;  %v2645_v46 = vld [vmem:[#allocation2 + $0x28] sm:$0xff]  ;;  %v2649_v48 = vld [vmem:[#allocation2 + $0x30] sm:$0xff]  ;;  %v2651_v49 = vld [vmem:[#allocation2 + $0x38] sm:$0xff] }
  0xdf   : > { %847 = vxpose.xlu0.c.b16.cont [3/8] %v823_v24, 128  ;;  %v839_v47 = vpack.c.bf16 %v2645_v46, %v2643_v45  ;;  %v1958_v50 = vld [vmem:[#allocation8 + $0x18] sm:$0xff]   ;;  %v1959_v51 = vld [vmem:[#allocation8 + $0x20] sm:$0xff]   ;;  %v840_v52 = vpack.c.bf16 %v2651_v49, %v2649_v48  ;;  %v2657_v54 = vld [vmem:[#allocation2 + $0x48] sm:$0xff] }
  0xe0   : > { %v2655_v53 = vld [vmem:[#allocation2 + $0x40] sm:$0xff]  ;;  %v2661_v56 = vld [vmem:[#allocation2 + $0x50] sm:$0xff]  ;;  %v2663_v57 = vld [vmem:[#allocation2 + $0x58] sm:$0xff] }
  0xe1   : > { %1652 = vmatpush3.bf16.msra.mxu0 %v1949_v25  ;;  %v841_v55 = vpack.c.bf16 %v2657_v54, %v2655_v53  ;;  %v1960_v58 = vld [vmem:[#allocation8 + $0x28] sm:$0xff]   ;;  %v1961_v59 = vld [vmem:[#allocation8 + $0x30] sm:$0xff]   ;;  %v842_v60 = vpack.c.bf16 %v2663_v57, %v2661_v56  ;;  %v2667_v61 = vld [vmem:[#allocation2 + $0x60] sm:$0xff] }
  0xe2   : > { %1653 = vmatprep.subr.bf16.mxu0 %v1950_v27  ;;  %v2669_v62 = vld [vmem:[#allocation2 + $0x68] sm:$0xff]  ;;  %v2673_v0 = vld [vmem:[#allocation2 + $0x70] sm:$0xff]  ;;  %v2675_v1 = vld [vmem:[#allocation2 + $0x78] sm:$0xff] }
  0xe3   : > { %848 = vxpose.xlu0.c.b16.cont [4/8] %v824_v26, 128  ;;  %v843_v63 = vpack.c.bf16 %v2669_v62, %v2667_v61  ;;  %v1962_v2 = vld [vmem:[#allocation8 + $0x38] sm:$0xff]   ;;  %v844_v3 = vpack.c.bf16 %v2675_v1, %v2673_v0  ;;  %v829_v12 = vld [vmem:[#allocation4] sm:$0xff] }
  0xe4   : > { %1727 = vmatprep.mubr.bf16.mxu1 %v829_v12  ;;  %v2683_v16 = vld [vmem:[%s2478_s19] sm:$0xff] }
  0xe5   : > { %1654 = vmatpush3.bf16.msra.mxu0 %v1950_v27  ;;  %v627_v17 = vrot.slane %v2683_v16, %v626_v15 }
  0xe6   : > { %1655 = vmatprep.subr.bf16.mxu0 %v1951_v30 }
  0xe7   : > { %849 = vxpose.xlu0.c.b16.cont [5/8] %v825_v29, 128 }
  0xe9   : > { %1656 = vmatpush3.bf16.msra.mxu0 %v1951_v30 }
  0xea   : > { %1657 = vmatprep.subr.bf16.mxu0 %v1952_v32 }
  0xeb   : > { %850 = vxpose.xlu0.c.b16.cont [6/8] %v826_v31, 128 }
  0xed   : > { %1658 = vmatpush3.bf16.msra.mxu0 %v1952_v32 }
  0xee   : > { %1659 = vmatprep.subr.bf16.mxu0 %v1953_v34 }
  0xef   : > { %851 = vxpose.xlu0.c.b16.cont [7/8] %v827_v33, 128 }
  0xf1   : > { %1660 = vmatpush3.bf16.msra.mxu0 %v1953_v34 }
  0xf2   : > { %1661 = vmatprep.subr.bf16.mxu0 %v1954_v36 }
  0xf3   : > { %852 = vxpose.xlu0.c.b16.end [8/8] %v828_v35, 128 }
  0xf5   : > { %1662 = vmatpush3.bf16.msra.mxu0 %v1954_v36 }
  0xf6   : > { %1679 = vmatprep.subr.bf16.mxu0 %v837_v39 }
  0xf8   : > { %1664 = vmatmul.mubr.bf16.vlgmr.msra.gmra.mrb[0].mxu0 %v1956_v42 }
  0xf9   : > { %1680 = vmatpush3.bf16.msra.mxu0 %v837_v39  ;;  %1667 = vmatprep.mubr.bf16.mxu0 %v1957_v43 }
  0xfa   : > { %1681 = vmatprep.subr.bf16.mxu0 %v838_v44 }
  0xfd   : > { %1682 = vmatpush3.bf16.msra.mxu0 %v838_v44 }
  0xfe   : > { %1683 = vmatprep.subr.bf16.mxu0 %v839_v47 }
 0x100   : > { %1668 = vmatmul.mubr.bf16.gmra.mrb[4].mxu0 %v1958_v50 }
 0x101   : > { %1684 = vmatpush3.bf16.msra.mxu0 %v839_v47  ;;  %1671 = vmatprep.mubr.bf16.mxu0 %v1959_v51 }
 0x102   : > { %1685 = vmatprep.subr.bf16.mxu0 %v840_v52 }
 0x105   : > { %1686 = vmatpush3.bf16.msra.mxu0 %v840_v52 }
 0x106   : > { %1687 = vmatprep.subr.bf16.mxu0 %v841_v55 }
 0x108   : > { %1672 = vmatmul.mubr.bf16.gmra.mrb[8].mxu0 %v1960_v58 }
 0x109   : > { %1688 = vmatpush3.bf16.msra.mxu0 %v841_v55  ;;  %1675 = vmatprep.mubr.bf16.mxu0 %v1961_v59 }
 0x10a   : > { %1689 = vmatprep.subr.bf16.mxu0 %v842_v60 }
 0x10d   : > { %1690 = vmatpush3.bf16.msra.mxu0 %v842_v60 }
 0x10e   : > { %1691 = vmatprep.subr.bf16.mxu0 %v843_v63 }
 0x110   : > { %1676 = vmatmul.mubr.bf16.gmra.mrb[12].mxu0 %v1962_v2 }
 0x111   : > { %1692 = vmatpush3.bf16.msra.mxu0 %v843_v63 }
 0x112   : > { %1693 = vmatprep.subr.bf16.mxu0 %v844_v3 }
 0x115   : > { %1694 = vmatpush3.bf16.msra.mxu0 %v844_v3 }
 0x13d   : > { %v853_v4 = vpop.trf.xlu0 }
 0x13e   : > { %1695 = vmatprep.mubr.bf16.mxu0 %v853_v4 }
 0x141   : > { %v854_v5 = vpop.trf.xlu0 }
 0x142   : > { %1696 = vmatmul.mubr.bf16.vlgmr.msra.gmra.mrb[0].mxu0 %v854_v5 }
 0x145   : > { %v855_v6 = vpop.trf.xlu0 }
 0x146   : > { %1699 = vmatprep.mubr.bf16.mxu0 %v855_v6 }
 0x149   : > { %v856_v7 = vpop.trf.xlu0 }
 0x14a   : > { %1700 = vmatmul.mubr.bf16.gmra.mrb[4].mxu0 %v856_v7 }
 0x14d   : > { %v857_v8 = vpop.trf.xlu0 }
 0x14e   : > { %1703 = vmatprep.mubr.bf16.mxu0 %v857_v8 }
 0x151   : > { %v858_v9 = vpop.trf.xlu0 }
 0x152   : > { %1704 = vmatmul.mubr.bf16.gmra.mrb[8].mxu0 %v858_v9 }
 0x155   : > { %v859_v10 = vpop.trf.xlu0 }
 0x156   : > { %1707 = vmatprep.mubr.bf16.mxu0 %v859_v10 }
 0x159   : > { %v860_v11 = vpop.trf.xlu0 }
 0x15a   : > { %1708 = vmatmul.mubr.bf16.gmra.mrb[12].mxu0 %v860_v11 }
 0x215   : > { %v1697_v18 = vpop.f32.mrb[0].mxu0 }
 0x216   : > { %v1831_v19 = vadd.f32 %v1697_v18, %v627_v17  ;;  %v895_v20 = vpop.f32.mrb[1].mxu0 }
 0x217   : > { %v1832_v21 = vadd.f32 %v895_v20, %v627_v17  ;;  %v1698_v22 = vpop.f32.mrb[2].mxu0 }
 0x218   : > { %v1833_v23 = vadd.f32 %v1698_v22, %v627_v17  ;;  %v898_v24 = vpop.f32.mrb[3].mxu0  ;;  %v960_v26 = vmax.f32 %v1831_v19, 0.0 }
 0x219   : > { %v1834_v25 = vadd.f32 %v898_v24, %v627_v17  ;;  %v958_v28 = vmax.f32 %v1832_v21, 0.0 }
 0x21a   : > { %v961_v27 = vmax.f32 %v1833_v23, 0.0 }
 0x21b   : > { %v959_v29 = vmax.f32 %v1834_v25, 0.0 }
 0x21c   : > { %v975_v30 = vpack.c.bf16 %v961_v27, %v960_v26 }
 0x21d   : > { %v1701_v31 = vpop.f32.mrb[4].mxu0  ;;  %v974_v32 = vpack.c.bf16 %v959_v29, %v958_v28  ;;  %v1115_v29 = vld [vmem:[%s2476_s18] sm:$0xff] }
 0x21e   : > { %v1835_v33 = vadd.f32 %v1701_v31, %v627_v17  ;;  %v911_v34 = vpop.f32.mrb[5].mxu0 }
 0x21f   : > { %v1836_v35 = vadd.f32 %v911_v34, %v627_v17  ;;  %v1702_v36 = vpop.f32.mrb[6].mxu0  ;;  %1711 = vmatprep.subr.bf16.mxu1 %v974_v32  ;;  %v831_v34 = vld [vmem:[#allocation4 + $0x10] sm:$0xff] }
 0x220   : > { %v1837_v39 = vadd.f32 %v1702_v36, %v627_v17  ;;  %v914_v42 = vpop.f32.mrb[7].mxu0  ;;  %1712 = vmatpush3.bf16.msra.mxu1 %v974_v32  ;;  %v964_v44 = vmax.f32 %v1835_v33, 0.0  ;;  %v1118_v32 = vld [vmem:[%s2476_s18 + $0x18] sm:$0xff]  ;;  %v830_v33 = vld [vmem:[#allocation4 + $0x8] sm:$0xff]  ;;  %v1119_v36 = vld [vmem:[%s2476_s18 + $0x20] sm:$0xff] }
 0x221   : > { %v1838_v43 = vadd.f32 %v914_v42, %v627_v17  ;;  %1713 = vmatprep.subr.bf16.mxu1 %v975_v30  ;;  %v962_v50 = vmax.f32 %v1836_v35, 0.0 }
 0x222   : > { %v965_v47 = vmax.f32 %v1837_v39, 0.0  ;;  %v1120_v39 = vld [vmem:[%s2476_s18 + $0x28] sm:$0xff] }
 0x223   : > { %v963_v51 = vmax.f32 %v1838_v43, 0.0  ;;  %v1807_v42 = vpack.c.bf16 %v1120_v39, %v1119_v36  ;;  %v1121_v43 = vld [vmem:[%s2476_s18 + $0x30] sm:$0xff] }
 0x224   : > { %v977_v52 = vpack.c.bf16 %v965_v47, %v964_v44  ;;  %1714 = vmatpush3.bf16.msra.mxu1 %v975_v30  ;;  %v1116_v30 = vld [vmem:[%s2476_s18 + $0x8] sm:$0xff]  ;;  %v1122_v44 = vld [vmem:[%s2476_s18 + $0x38] sm:$0xff] }
 0x225   : > { %v976_v55 = vpack.c.bf16 %v963_v51, %v962_v50  ;;  %v1705_v58 = vpop.f32.mrb[8].mxu0  ;;  %v1799_v31 = vpack.c.bf16 %v1116_v30, %v1115_v29  ;;  %v832_v47 = vld [vmem:[#allocation4 + $0x18] sm:$0xff]  ;;  %v833_v50 = vld [vmem:[#allocation4 + $0x20] sm:$0xff]  ;;  %v1811_v51 = vpack.c.bf16 %v1122_v44, %v1121_v43 }
 0x226   : > { %v1839_v59 = vadd.f32 %v1705_v58, %v627_v17  ;;  %v927_v60 = vpop.f32.mrb[9].mxu0 }
 0x227   : > { %v1840_v63 = vadd.f32 %v927_v60, %v627_v17  ;;  %v1706_v2 = vpop.f32.mrb[10].mxu0  ;;  %1715 = vmatprep.subr.bf16.mxu1 %v976_v55  ;;  %v1126_v60 = vld [vmem:[%s2476_s18 + $0x58] sm:$0xff] }
 0x228   : > { %v1841_v3 = vadd.f32 %v1706_v2, %v627_v17  ;;  %v930_v4 = vpop.f32.mrb[11].mxu0  ;;  %1716 = vmatpush3.bf16.msra.mxu1 %v976_v55  ;;  %v968_v6 = vmax.f32 %v1839_v59, 0.0  ;;  %v1124_v55 = vld [vmem:[%s2476_s18 + $0x48] sm:$0xff]  ;;  %v1125_v59 = vld [vmem:[%s2476_s18 + $0x50] sm:$0xff] }
 0x229   : > { %v1842_v5 = vadd.f32 %v930_v4, %v627_v17  ;;  %1717 = vmatprep.subr.bf16.mxu1 %v977_v52  ;;  %v966_v8 = vmax.f32 %v1840_v63, 0.0  ;;  %v834_v63 = vld [vmem:[#allocation4 + $0x28] sm:$0xff]  ;;  %v835_v2 = vld [vmem:[#allocation4 + $0x30] sm:$0xff]  ;;  %v1127_v4 = vld [vmem:[%s2476_s18 + $0x60] sm:$0xff] }
 0x22a   : > { %v969_v7 = vmax.f32 %v1841_v3, 0.0  ;;  %v1819_v3 = vpack.c.bf16 %v1126_v60, %v1125_v59 }
 0x22b   : > { %v967_v9 = vmax.f32 %v1842_v5, 0.0  ;;  %v1128_v5 = vld [vmem:[%s2476_s18 + $0x68] sm:$0xff] }
 0x22c   : > { %v979_v10 = vpack.c.bf16 %v969_v7, %v968_v6  ;;  %1718 = vmatpush3.bf16.msra.mxu1 %v977_v52  ;;  %v1123_v52 = vld [vmem:[%s2476_s18 + $0x40] sm:$0xff]  ;;  %v1823_v6 = vpack.c.bf16 %v1128_v5, %v1127_v4  ;;  %v836_v7 = vld [vmem:[#allocation4 + $0x38] sm:$0xff] }
 0x22d   : > { %v978_v11 = vpack.c.bf16 %v967_v9, %v966_v8  ;;  %v1709_v12 = vpop.f32.mrb[12].mxu0  ;;  %v1815_v58 = vpack.c.bf16 %v1124_v55, %v1123_v52  ;;  %v1129_v8 = vld [vmem:[%s2476_s18 + $0x70] sm:$0xff]  ;;  %v1130_v9 = vld [vmem:[%s2476_s18 + $0x78] sm:$0xff] }
 0x22e   : > { %v1843_v13 = vadd.f32 %v1709_v12, %v627_v17  ;;  %v943_v15 = vpop.f32.mrb[13].mxu0 }
 0x22f   : > { %v1844_v18 = vadd.f32 %v943_v15, %v627_v17  ;;  %v1710_v19 = vpop.f32.mrb[14].mxu0  ;;  %1719 = vmatprep.subr.bf16.mxu1 %v978_v11 }
 0x230   : > { %v1845_v20 = vadd.f32 %v1710_v19, %v627_v17  ;;  %v946_v21 = vpop.f32.mrb[15].mxu0  ;;  %1720 = vmatpush3.bf16.msra.mxu1 %v978_v11  ;;  %v972_v23 = vmax.f32 %v1843_v13, 0.0  ;;  %v1081_v11 = vsub.s32 2, %v2679_v14 }
 0x231   : > { %v1846_v22 = vadd.f32 %v946_v21, %v627_v17  ;;  %1721 = vmatprep.subr.bf16.mxu1 %v979_v10  ;;  %v970_v25 = vmax.f32 %v1844_v18, 0.0  ;;  %v1117_v17 = vld [vmem:[%s2476_s18 + $0x10] sm:$0xff] }
 0x232   : > { %v973_v24 = vmax.f32 %v1845_v20, 0.0  ;;  %v1803_v35 = vpack.c.bf16 %v1118_v32, %v1117_v17  ;;  %v1082_v12 = vrot.slane %v2683_v16, %v1081_v11 }
 0x233   : > { %v971_v26 = vmax.f32 %v1846_v22, 0.0 }
 0x234   : > { %v981_v27 = vpack.c.bf16 %v973_v24, %v972_v23  ;;  %1722 = vmatpush3.bf16.msra.mxu1 %v979_v10  ;;  %v1827_v10 = vpack.c.bf16 %v1130_v9, %v1129_v8  ;;  %v1083_v13 = vmul.f32 %v1082_v12, %v2631_v37  ;;  %v1084_v18 = vmul.f32 %v1082_v12, %v2633_v38 }
 0x235   : > { %v980_v28 = vpack.c.bf16 %v971_v26, %v970_v25  ;;  %v1085_v19 = vmul.f32 %v1082_v12, %v2637_v40  ;;  %v1086_v24 = vmul.f32 %v1082_v12, %v2639_v41  ;;  %v1088_v29 = vmul.f32 %v1082_v12, %v2645_v46 }
 0x236   : > { %v1089_v38 = vmul.f32 %v1082_v12, %v2649_v48  ;;  %v1090_v41 = vmul.f32 %v1082_v12, %v2651_v49  ;;  %v1092_v46 = vmul.f32 %v1082_v12, %v2657_v54  ;;  %v1093_v48 = vmul.f32 %v1082_v12, %v2661_v56 }
 0x237   : > { %1723 = vmatprep.subr.bf16.mxu1 %v980_v28  ;;  %v1094_v49 = vmul.f32 %v1082_v12, %v2663_v57  ;;  %v1096_v54 = vmul.f32 %v1082_v12, %v2669_v62  ;;  %v1097_v56 = vmul.f32 %v1082_v12, %v2673_v0  ;;  %v1098_v57 = vmul.f32 %v1082_v12, %v2675_v1 }
 0x238   : > { %1724 = vmatpush3.bf16.msra.mxu1 %v980_v28  ;;  %v1282_v62 = vsub.s32 3, %v2679_v14 }
 0x239   : > { %1725 = vmatprep.subr.bf16.mxu1 %v981_v27 }
 0x23a   : > { %v2727_v4 = vrot.slane %v2683_v16, %v1282_v62 }
 0x23c   : > { %1726 = vmatpush3.bf16.msra.mxu1 %v981_v27  ;;  %v1087_v27 = vmul.f32 %v1082_v12, %v2643_v45  ;;  %v1091_v45 = vmul.f32 %v1082_v12, %v2655_v53  ;;  %v1095_v53 = vmul.f32 %v1082_v12, %v2667_v61 }
 0x23d   : > { %1800 = vmatprep.subr.bf16.mxu1 %v1799_v31 }
 0x23f   : > { %1728 = vmatmul.mubr.bf16.vlgmr.msra.gmra.mrb[0].mxu1 %v830_v33 }
 0x240   : > { %1731 = vmatprep.mubr.bf16.mxu1 %v831_v34  ;;  %1802 = vmatpush3.bf16.msra.mxu1 %v1799_v31 }
 0x241   : > { %1804 = vmatprep.subr.bf16.mxu1 %v1803_v35 }
 0x244   : > { %1806 = vmatpush3.bf16.msra.mxu1 %v1803_v35 }
 0x245   : > { %1808 = vmatprep.subr.bf16.mxu1 %v1807_v42 }
 0x247   : > { %1732 = vmatmul.mubr.bf16.gmra.mrb[4].mxu1 %v832_v47 }
 0x248   : > { %1735 = vmatprep.mubr.bf16.mxu1 %v833_v50  ;;  %1810 = vmatpush3.bf16.msra.mxu1 %v1807_v42 }
 0x249   : > { %1812 = vmatprep.subr.bf16.mxu1 %v1811_v51 }
 0x24c   : > { %1814 = vmatpush3.bf16.msra.mxu1 %v1811_v51 }
 0x24d   : > { %1816 = vmatprep.subr.bf16.mxu1 %v1815_v58 }
 0x24f   : > { %1736 = vmatmul.mubr.bf16.gmra.mrb[8].mxu1 %v834_v63 }
 0x250   : > { %1739 = vmatprep.mubr.bf16.mxu1 %v835_v2  ;;  %1818 = vmatpush3.bf16.msra.mxu1 %v1815_v58  ;;  %v1133_v2 = vsub.s32 1, %v2679_v14 }
 0x251   : > { %1820 = vmatprep.subr.bf16.mxu1 %v1819_v3 }
 0x252   : > { %v2723_v0 = vrot.slane %v2683_v16, %v1133_v2 }
 0x254   : > { %1822 = vmatpush3.bf16.msra.mxu1 %v1819_v3  ;;  %v1302_v3 = vsub.s32 4, %v2679_v14 }
 0x255   : > { %1824 = vmatprep.subr.bf16.mxu1 %v1823_v6 }
 0x257   : > { %1740 = vmatmul.mubr.bf16.gmra.mrb[12].mxu1 %v836_v7 }
 0x258   : > { %1826 = vmatpush3.bf16.msra.mxu1 %v1823_v6  ;;  %v2731_v6 = vrot.slane %v2683_v16, %v1302_v3 }
 0x259   : > { %1828 = vmatprep.subr.bf16.mxu1 %v1827_v10 }
 0x25c   : > { %1830 = vmatpush3.bf16.msra.mxu1 %v1827_v10 }
 0x312   : > { %v1729_v15 = vpop.f32.mrb[0].mxu1 }
 0x313   : > { %v1016_v20 = vpop.f32.mrb[1].mxu1  ;;  %v1101_v26 = vadd.f32 %v1729_v15, %v1085_v19 }
 0x314   : > { %v1099_v21 = vadd.f32 %v1083_v13, %v1016_v20  ;;  %v1730_v22 = vpop.f32.mrb[2].mxu1 }
 0x315   : > { %v1019_v23 = vpop.f32.mrb[3].mxu1  ;;  %v1102_v28 = vadd.f32 %v1730_v22, %v1086_v24 }
 0x316   : > { %v1100_v25 = vadd.f32 %v1084_v18, %v1019_v23  ;;  %1775 = vmatprep.mubr.f32.mxu1 %v1099_v21 }
 0x318   : > { %1776 = vmatmul.mubr.f32.vlgmr.msra.gmra.mrb[16].mxu1 %v1100_v25 }
 0x319   : > { %1778 = vmatprep.mubr.f32.mxu1 %v1101_v26 }
 0x31a   : > { %v1733_v37 = vpop.f32.mrb[4].mxu1 }
 0x31b   : > { %v1032_v40 = vpop.f32.mrb[5].mxu1  ;;  %v1105_v33 = vadd.f32 %v1733_v37, %v1089_v38 }
 0x31c   : > { %v1103_v30 = vadd.f32 %v1087_v27, %v1032_v40  ;;  %v1734_v31 = vpop.f32.mrb[6].mxu1  ;;  %1779 = vmatmul.mubr.f32.gmra.mrb[18].mxu1 %v1102_v28 }
 0x31d   : > { %v1035_v17 = vpop.f32.mrb[7].mxu1  ;;  %v1106_v34 = vadd.f32 %v1734_v31, %v1090_v41 }
 0x31e   : > { %v1104_v32 = vadd.f32 %v1088_v29, %v1035_v17  ;;  %1781 = vmatprep.mubr.f32.mxu1 %v1103_v30 }
 0x320   : > { %1782 = vmatmul.mubr.f32.gmra.mrb[20].mxu1 %v1104_v32 }
 0x321   : > { %1784 = vmatprep.mubr.f32.mxu1 %v1105_v33 }
 0x322   : > { %v1737_v35 = vpop.f32.mrb[8].mxu1 }
 0x323   : > { %v1048_v36 = vpop.f32.mrb[9].mxu1  ;;  %v1109_v47 = vadd.f32 %v1737_v35, %v1093_v48 }
 0x324   : > { %v1107_v39 = vadd.f32 %v1091_v45, %v1048_v36  ;;  %v1738_v42 = vpop.f32.mrb[10].mxu1  ;;  %1785 = vmatmul.mubr.f32.gmra.mrb[22].mxu1 %v1106_v34 }
 0x325   : > { %v1051_v43 = vpop.f32.mrb[11].mxu1  ;;  %v1110_v50 = vadd.f32 %v1738_v42, %v1094_v49 }
 0x326   : > { %v1108_v44 = vadd.f32 %v1092_v46, %v1051_v43  ;;  %1787 = vmatprep.mubr.f32.mxu1 %v1107_v39 }
 0x328   : > { %1788 = vmatmul.mubr.f32.gmra.mrb[24].mxu1 %v1108_v44 }
 0x329   : > { %1790 = vmatprep.mubr.f32.mxu1 %v1109_v47 }
 0x32a   : > { %v1741_v51 = vpop.f32.mrb[12].mxu1 }
 0x32b   : > { %v1064_v52 = vpop.f32.mrb[13].mxu1  ;;  %v1113_v63 = vadd.f32 %v1741_v51, %v1097_v56 }
 0x32c   : > { %v1111_v55 = vadd.f32 %v1095_v53, %v1064_v52  ;;  %v1742_v58 = vpop.f32.mrb[14].mxu1  ;;  %1791 = vmatmul.mubr.f32.gmra.mrb[26].mxu1 %v1110_v50 }
 0x32d   : > { %v1067_v59 = vpop.f32.mrb[15].mxu1  ;;  %v1114_v61 = vadd.f32 %v1742_v58, %v1098_v57 }
 0x32e   : > { %v1112_v60 = vadd.f32 %v1096_v54, %v1067_v59  ;;  %1793 = vmatprep.mubr.f32.mxu1 %v1111_v55 }
 0x330   : > { %1794 = vmatmul.mubr.f32.gmra.mrb[28].mxu1 %v1112_v60 }
 0x331   : > { %1796 = vmatprep.mubr.f32.mxu1 %v1113_v63 }
 0x334   : > { %1797 = vmatmul.mubr.f32.gmra.mrb[30].mxu1 %v1114_v61 }
 0x3eb   : > { %v1777_v1 = vpop.f32.mrb[16].mxu1 }
 0x3ec   : > { %v1207_v5 = vadd.f32 %v1777_v1, %v2723_v0  ;;  %v1201_v7 = vpop.f32.mrb[17].mxu1 }
 0x3ed   : > { %v1202_v8 = vadd.f32 %v1201_v7, %v2723_v0 }
 0x3ee   : > { %v1285_v9 = vmul.f32 %v2727_v4, %v1207_v5 }
 0x3ef   : > { %v1284_v10 = vmul.f32 %v2727_v4, %v1202_v8  ;;  %v1780_v11 = vpop.f32.mrb[18].mxu1 }
 0x3f0   : > { %v2737_v12 = vadd.f32 %v2731_v6, %v1285_v9  ;;  %v1217_v14 = vadd.f32 %v1780_v11, %v2723_v0  ;;  %v1211_v13 = vpop.f32.mrb[19].mxu1 }
 0x3f1   : > { %v2741_v15 = vadd.f32 %v2731_v6, %v1284_v10  ;;  %v1212_v16 = vadd.f32 %v1211_v13, %v2723_v0 }
 0x3f2   : > { %v1321_v18 = vmax.f32 %v2737_v12, 0.0  ;;  %v1287_v19 = vmul.f32 %v2727_v4, %v1217_v14 }
 0x3f3   : > { %v1320_v20 = vmax.f32 %v2741_v15, 0.0  ;;  %v1286_v21 = vmul.f32 %v2727_v4, %v1212_v16  ;;  %v1783_v22 = vpop.f32.mrb[20].mxu1 }
 0x3f4   : > { %1337 = vst [vmem:[#allocation2 + $0x8] sm:$0xff] %v1321_v18  ;;  %v2751_v23 = vadd.f32 %v2731_v6, %v1287_v19  ;;  %v1227_v24 = vadd.f32 %v1783_v22, %v2723_v0  ;;  %v1221_v25 = vpop.f32.mrb[21].mxu1  ;;  %1357 = vst [vmem:[#allocation13 + $0x8] sm:$0xff] (!%p1560_p6), %v1321_v18 }
 0x3f5   : > { %1336 = vst [vmem:[#allocation2] sm:$0xff] %v1320_v20  ;;  %v2757_v26 = vadd.f32 %v2731_v6, %v1286_v21  ;;  %v1222_v27 = vadd.f32 %v1221_v25, %v2723_v0  ;;  %1356 = vst [vmem:[#allocation13] sm:$0xff] (!%p1560_p6), %v1320_v20 }
 0x3f6   : > { %v1323_v28 = vmax.f32 %v2751_v23, 0.0  ;;  %v1289_v37 = vmul.f32 %v2727_v4, %v1227_v24 }
 0x3f7   : > { %v1322_v29 = vmax.f32 %v2757_v26, 0.0  ;;  %v1288_v38 = vmul.f32 %v2727_v4, %v1222_v27  ;;  %v1786_v40 = vpop.f32.mrb[22].mxu1 }
 0x3f8   : > { %1339 = vst [vmem:[#allocation2 + $0x18] sm:$0xff] %v1323_v28  ;;  %v2767_v30 = vadd.f32 %v2731_v6, %v1289_v37  ;;  %v1237_v31 = vadd.f32 %v1786_v40, %v2723_v0  ;;  %v1231_v17 = vpop.f32.mrb[23].mxu1  ;;  %1359 = vst [vmem:[#allocation13 + $0x18] sm:$0xff] (!%p1560_p6), %v1323_v28 }
 0x3f9   : > { %1338 = vst [vmem:[#allocation2 + $0x10] sm:$0xff] %v1322_v29  ;;  %v2773_v41 = vadd.f32 %v2731_v6, %v1288_v38  ;;  %v1232_v32 = vadd.f32 %v1231_v17, %v2723_v0  ;;  %1358 = vst [vmem:[#allocation13 + $0x10] sm:$0xff] (!%p1560_p6), %v1322_v29 }
 0x3fa   : > { %v1325_v33 = vmax.f32 %v2767_v30, 0.0  ;;  %v1291_v45 = vmul.f32 %v2727_v4, %v1237_v31 }
 0x3fb   : > { %v1324_v34 = vmax.f32 %v2773_v41, 0.0  ;;  %v1290_v35 = vmul.f32 %v2727_v4, %v1232_v32  ;;  %v1789_v46 = vpop.f32.mrb[24].mxu1 }
 0x3fc   : > { %1341 = vst [vmem:[#allocation2 + $0x28] sm:$0xff] %v1325_v33  ;;  %v2783_v48 = vadd.f32 %v2731_v6, %v1291_v45  ;;  %v1247_v36 = vadd.f32 %v1789_v46, %v2723_v0  ;;  %v1241_v39 = vpop.f32.mrb[25].mxu1  ;;  %1361 = vst [vmem:[#allocation13 + $0x28] sm:$0xff] (!%p1560_p6), %v1325_v33 }
 0x3fd   : > { %1340 = vst [vmem:[#allocation2 + $0x20] sm:$0xff] %v1324_v34  ;;  %v1310_v42 = vadd.f32 %v2731_v6, %v1290_v35  ;;  %v1242_v43 = vadd.f32 %v1241_v39, %v2723_v0  ;;  %1360 = vst [vmem:[#allocation13 + $0x20] sm:$0xff] (!%p1560_p6), %v1324_v34 }
 0x3fe   : > { %v1327_v49 = vmax.f32 %v2783_v48, 0.0  ;;  %v1293_v44 = vmul.f32 %v2727_v4, %v1247_v36 }
 0x3ff   : > { %v1326_v47 = vmax.f32 %v1310_v42, 0.0  ;;  %v1292_v53 = vmul.f32 %v2727_v4, %v1242_v43  ;;  %v1792_v50 = vpop.f32.mrb[26].mxu1 }
 0x400   : > { %1343 = vst [vmem:[#allocation2 + $0x38] sm:$0xff] %v1327_v49  ;;  %v1313_v51 = vadd.f32 %v2731_v6, %v1293_v44  ;;  %v1257_v54 = vadd.f32 %v1792_v50, %v2723_v0  ;;  %v1251_v56 = vpop.f32.mrb[27].mxu1  ;;  %1363 = vst [vmem:[#allocation13 + $0x38] sm:$0xff] (!%p1560_p6), %v1327_v49 }
 0x401   : > { %1342 = vst [vmem:[#allocation2 + $0x30] sm:$0xff] %v1326_v47  ;;  %v1312_v52 = vadd.f32 %v2731_v6, %v1292_v53  ;;  %v1252_v55 = vadd.f32 %v1251_v56, %v2723_v0  ;;  %1362 = vst [vmem:[#allocation13 + $0x30] sm:$0xff] (!%p1560_p6), %v1326_v47 }
 0x402   : > { %v1329_v58 = vmax.f32 %v1313_v51, 0.0  ;;  %v1295_v59 = vmul.f32 %v2727_v4, %v1257_v54 }
 0x403   : > { %v1328_v57 = vmax.f32 %v1312_v52, 0.0  ;;  %v1294_v60 = vmul.f32 %v2727_v4, %v1252_v55  ;;  %v1795_v63 = vpop.f32.mrb[28].mxu1 }
 0x404   : > { %1345 = vst [vmem:[#allocation2 + $0x48] sm:$0xff] %v1329_v58  ;;  %v1315_v61 = vadd.f32 %v2731_v6, %v1295_v59  ;;  %v1267_v2 = vadd.f32 %v1795_v63, %v2723_v0  ;;  %v1261_v62 = vpop.f32.mrb[29].mxu1  ;;  %1365 = vst [vmem:[#allocation13 + $0x48] sm:$0xff] (!%p1560_p6), %v1329_v58 }
 0x405   : > { %1344 = vst [vmem:[#allocation2 + $0x40] sm:$0xff] %v1328_v57  ;;  %v1314_v3 = vadd.f32 %v2731_v6, %v1294_v60  ;;  %v1262_v1 = vadd.f32 %v1261_v62, %v2723_v0  ;;  %1364 = vst [vmem:[#allocation13 + $0x40] sm:$0xff] (!%p1560_p6), %v1328_v57 }
 0x406   : > { %v1331_v5 = vmax.f32 %v1315_v61, 0.0  ;;  %v1297_v7 = vmul.f32 %v2727_v4, %v1267_v2 }
 0x407   : > { %v1330_v8 = vmax.f32 %v1314_v3, 0.0  ;;  %v1296_v9 = vmul.f32 %v2727_v4, %v1262_v1  ;;  %v1798_v10 = vpop.f32.mrb[30].mxu1 }
 0x408   : > { %1347 = vst [vmem:[#allocation2 + $0x58] sm:$0xff] %v1331_v5  ;;  %v1317_v11 = vadd.f32 %v2731_v6, %v1297_v7  ;;  %v1277_v14 = vadd.f32 %v1798_v10, %v2723_v0  ;;  %v1271_v13 = vpop.f32.mrb[31].mxu1  ;;  %1367 = vst [vmem:[#allocation13 + $0x58] sm:$0xff] (!%p1560_p6), %v1331_v5 }
 0x409   : > { %1346 = vst [vmem:[#allocation2 + $0x50] sm:$0xff] %v1330_v8  ;;  %v1316_v16 = vadd.f32 %v2731_v6, %v1296_v9  ;;  %v1272_v19 = vadd.f32 %v1271_v13, %v2723_v0  ;;  %1366 = vst [vmem:[#allocation13 + $0x50] sm:$0xff] (!%p1560_p6), %v1330_v8 }
 0x40a   : > { %v1333_v21 = vmax.f32 %v1317_v11, 0.0  ;;  %v1299_v22 = vmul.f32 %v2727_v4, %v1277_v14 }
 0x40b   : > { %v1332_v24 = vmax.f32 %v1316_v16, 0.0  ;;  %v1298_v25 = vmul.f32 %v2727_v4, %v1272_v19  ;;  %1355 = sbr.rel (%p1560_p6) target bundleno = 1042 (0x412), region = 76 }
 0x40c   : > { %1349 = vst [vmem:[#allocation2 + $0x68] sm:$0xff] %v1333_v21  ;;  %v1319_v27 = vadd.f32 %v2731_v6, %v1299_v22  ;;  %1369 = vst [vmem:[#allocation13 + $0x68] sm:$0xff] (!%p1560_p6), %v1333_v21 }
 0x40d   : > { %1348 = vst [vmem:[#allocation2 + $0x60] sm:$0xff] %v1332_v24  ;;  %v1318_v37 = vadd.f32 %v2731_v6, %v1298_v25  ;;  %1368 = vst [vmem:[#allocation13 + $0x60] sm:$0xff] (!%p1560_p6), %v1332_v24 }
 0x40e   : > { %v1335_v38 = vmax.f32 %v1319_v27, 0.0 }
 0x40f   : > { %v1334_v40 = vmax.f32 %v1318_v37, 0.0 }
 0x410   : > { %1351 = vst [vmem:[#allocation2 + $0x78] sm:$0xff] %v1335_v38  ;;  %1371 = vst [vmem:[#allocation13 + $0x78] sm:$0xff] (!%p1560_p6), %v1335_v38 }
 0x411   : > { %1350 = vst [vmem:[#allocation2 + $0x70] sm:$0xff] %v1334_v40  ;;  %1370 = vst [vmem:[#allocation13 + $0x70] sm:$0xff] (!%p1560_p6), %v1334_v40 }
 0x412 PF: > { %p1903_p4 = scmp.eq.s32.totalorder %s2255_s28, 2  ;;  %s2193_s15 = smov [#allocation13]  }
 0x413   : > { %s1378_s10 = sshll.u32 %s2193_s15, 4  ;;  %s1379_s10 = int_to_ptr.vmem [resolvable:$true] %s1378_s10 }
 0x414   : > { %s2109_s21 = scalar_lea.vmem %s1379_s10, 2048  ;;  %p2116_p5 = scmp.lt.s32.totalorder %s1379_s10, %s1379_s10 }
 0x415   : > { %p2110_p0 = scmp.ne.s32.totalorder %s1379_s10, %s2109_s21  ;;  %p2117_p7 = scmp.lt.s32.totalorder %s2109_s21, %s2109_s21 }
 0x417   : > { %p2111_p8 = pnand %p2110_p0, %p1903_p4  ;;  %p2118_p13 = por %p2117_p7, %p2116_p5 }
 0x419   : > { %p2112_p11 = pneg %p2111_p8 }
 0x41b   : > { %p2119_p9 = pnand %p2118_p13, %p2112_p11 }
 0x41d   : > { %2122 = shalt.err (!%p2119_p9)
}
 0x41e   : > { %s2123_s13 = scalar_lea.hbm %s2869_s7, 2048 }
 0x41f   : > { %p2124_p10 = scmp.ne.s32.totalorder %s2869_s7, %s2123_s13  ;;  %p2129_p12 = scmp.lt.u32.totalorder %s2123_s13, %s2869_s7 }
 0x421   : > { %p2125_p1 = pnand %p2124_p10, %p1903_p4 }
 0x423   : > { %p2126_p3 = pneg %p2125_p1 }
 0x425   : > { %p2131_p2 = pnand %p2129_p12, %p2126_p3 }
 0x427   : > { %2134 = shalt.err (!%p2131_p2)
}
 0x428   : > { %s2194_s16 = smov 128   ;;  %s2195_s30 = smov 8  }
 0x429   : > { %1878 = dma.vmem_to_hbm [thread:$0]  (%p1903_p4), %s1379_s10, 2048, %s2869_s7, [#allocation7], %s2194_s16, %s2194_s16, %s2195_s30  }
 0x42a   : > { %2164 = dma.done.wait (%p1903_p4), [#allocation7], 2048  }
 0x42b   : > { %2166 = vsyncadd (%p1903_p4), [#allocation7], 4294965248 }
 0x42c PF: > { %s2916_s27 = sld [smem:[#allocation18_spill]]  ;;  %s2917_s26 = sld [smem:[#allocation19_spill]] }
 0x42d   : > { %p17_p6 = scmp.ge.s32.totalorder %s2258_s29, 5   ;;  %s2918_s24 = smov %s2173_s25 }
 0x42f   :  { %19 = sbr.rel (!%p17_p6) target bundleno = 8 (0x8), region = 122 }
 0x432   : > { %s2919_s25 = smov %s2916_s27  ;;  %s2920_s27 = smov %s2258_s29 }
 0x436   :  { %1394 = vsyncpa [#allocation6], 1 }
 0x437   :  { %1396 = vsyncpa [#allocation6 + $0x1], 1 }
 0x438   :  { %1397 = vsyncpa [#allocation9], 1 }
 0x439   :  { %1398 = vsyncpa [#allocation7], 1 }
 0x43a   :  { %1400 = vsyncpa [#allocation7 + $0x1], 1 }

</bundles_post_ra>
